<compile_context>
chip_gen: v7x
topology: tpu7x:2x2x1
jax: 0.10.0
libtpu: 0.0.40
codegen_flags: <defaults>
</compile_context>

<pallas_src>
import numpy as np
import jax
import jax.numpy as jnp
from jax.experimental import pallas as pl
from jax.experimental.pallas import tpu as pltpu

_F32_MAX = float(np.finfo(np.float32).max)


# ----------------------------------------------------------------------------
# Pallas kernel
# ----------------------------------------------------------------------------
def _make_discriminator_kernel(W_half):
    """Builds the kernel body; W_half = per-pool-phase column count (mult of 128)."""

    def relu_clean(x):
        # Exactly relu(nan_to_num(x)): nan->0, -inf->0 (via relu), +inf->f32max.
        return jnp.minimum(
            jnp.maximum(jnp.where(jnp.isnan(x), 0.0, x), 0.0), _F32_MAX)

    def kernel(hist_ref, state_ref,
               wt_ref, bc_ref,
               w1_ref, b1_ref,
               w2_ref, b2_ref, w3_ref, b3_ref, w4_ref, b4_ref,
               w5_ref, b5_ref,
               out_ref):
        bf16 = jnp.bfloat16

        # ---- Conv1d (all time positions, both pool phases) as ONE matmul ----
        # hist_ref: (B_t, L*C) f32; wt_ref: (L*C, 2*W_half) bf16 block-Toeplitz.
        z = jnp.dot(hist_ref[...].astype(bf16), wt_ref[...],
                    preferred_element_type=jnp.float32) + bc_ref[...]
        z = relu_clean(z)                                   # (B_t, 2*W_half)

        # ---- MaxPool1d(kernel=2, stride=2): one VPU max of aligned halves ----
        pooled = jnp.maximum(z[:, :W_half], z[:, W_half:])  # (B_t, W_half)

        # ---- fc_input: single matmul on [pooled | state] ----
        fc1_in = jnp.concatenate([pooled, state_ref[...]], axis=-1).astype(bf16)
        h = relu_clean(jnp.dot(fc1_in, w1_ref[...],
                               preferred_element_type=jnp.float32) + b1_ref[...])

        # ---- three hidden layers ----
        h = relu_clean(jnp.dot(h.astype(bf16), w2_ref[...],
                               preferred_element_type=jnp.float32) + b2_ref[...])
        h = relu_clean(jnp.dot(h.astype(bf16), w3_ref[...],
                               preferred_element_type=jnp.float32) + b3_ref[...])
        h = relu_clean(jnp.dot(h.astype(bf16), w4_ref[...],
                               preferred_element_type=jnp.float32) + b4_ref[...])

        # ---- output layer (N=1): VPU multiply + lane reduce, skip the MXU ----
        o = jnp.sum(h * w5_ref[...], axis=-1, keepdims=True) + b5_ref[...]  # (B_t, 1)
        # nan_to_num then sigmoid: only the nan->0 part matters under sigmoid
        # (sigmoid(+/-f32max) == sigmoid(+/-inf) == 1/0 exactly).
        o = jnp.where(jnp.isnan(o), 0.0, o)
        out_ref[...] = jax.nn.sigmoid(o)

    return kernel


# ----------------------------------------------------------------------------
# Wrapper (glue): parameter layout conversion + pallas_call
# ----------------------------------------------------------------------------
def _const_spec(arr):
    zeros = (0,) * arr.ndim
    return pl.BlockSpec(arr.shape, lambda i, _z=zeros: _z)


def discriminator_forward(history, state, torch_params, *, block_b=512):
    """history: (B, L, C) f32; state: (B, SF) f32; torch_params in PyTorch layouts.

    block_b: batch tile size.  v5e: 256-512, v6e: 512-1024.  v7x: 512-1024 but
    keep at least 2 grid steps (block_b <= round_down(B/2, 8)) so both
    TensorCores are used; beyond ~2048 pass an explicit vmem_limit_bytes.
    Weights stay VMEM-resident across grid steps (constant index maps);
    history/state/output tiles are pipelined against compute.
    """
    B, L, C = history.shape
    SF = state.shape[1]
    Wc, bc, W1, b1, W2, b2, W3, b3, W4, b4, W5, b5 = torch_params
    O, _, K = Wc.shape
    H = W2.shape[0]
    L_conv = L - K + 1
    P = (L_conv - 2) // 2 + 1
    PO = P * O
    pad = (-PO) % 128            # zero-pad each pool-phase half to 128 lanes
    W_half = PO + pad

    f32, bf16 = jnp.float32, jnp.bfloat16

    # --- block-Toeplitz conv+pool weight: (L*C, 2*W_half) ---
    # Column layout: half in {even, odd}, then (p, o); conv[b, o, t=2p+half] =
    # sum_{l,c} hist_flat[b, l*C+c] * wt[l*C+c, half*W_half + p*O + o].
    wc_kco = jnp.transpose(Wc, (2, 1, 0)).astype(f32)          # (K, C, O)
    wt5 = jnp.zeros((L, C, 2, W_half), f32)
    for half in range(2):
        for p in range(P):
            t = 2 * p + half
            wt5 = wt5.at[t:t + K, :, half, p * O:(p + 1) * O].set(wc_kco)
    wt = wt5.reshape(L * C, 2 * W_half).astype(bf16)

    bc_half = jnp.concatenate([jnp.tile(bc.astype(f32), P), jnp.zeros((pad,), f32)])
    bc_full = jnp.concatenate([bc_half, bc_half]).reshape(1, 2 * W_half)

    # --- fc_input weight: rows reordered to (p, o)-major + zero rows for pad,
    #     then the state rows appended (single fused fc1 matmul) ---
    w1 = W1.T.astype(f32)                                      # (O*P + SF, H)
    w1_hist = w1[:PO].reshape(O, P, H).transpose(1, 0, 2).reshape(PO, H)
    w1_comb = jnp.concatenate(
        [w1_hist, jnp.zeros((pad, H), f32), w1[PO:]], axis=0).astype(bf16)
    b1_2 = b1.reshape(1, H).astype(f32)

    w2b, b2_2 = W2.T.astype(bf16), b2.reshape(1, H).astype(f32)
    w3b, b3_2 = W3.T.astype(bf16), b3.reshape(1, H).astype(f32)
    w4b, b4_2 = W4.T.astype(bf16), b4.reshape(1, H).astype(f32)
    w5f = W5.reshape(1, H).astype(f32)                         # f32 (VPU path)
    b5_2 = b5.reshape(1, 1).astype(f32)

    # Lane-dense flattened history input (plain XLA reshape, contiguous).
    hist_flat = history.reshape(B, L * C)

    B_t = min(B, block_b)
    grid = (pl.cdiv(B, B_t),)

    kernel = _make_discriminator_kernel(W_half)

    weights = (wt, bc_full, w1_comb, b1_2,
               w2b, b2_2, w3b, b3_2, w4b, b4_2, w5f, b5_2)
    args = (hist_flat, state) + weights

    in_specs = [
        pl.BlockSpec((B_t, L * C), lambda i: (i, 0)),
        pl.BlockSpec((B_t, SF), lambda i: (i, 0)),
    ] + [_const_spec(a) for a in weights]
    out_specs = pl.BlockSpec((B_t, 1), lambda i: (i, 0))

    weight_bytes = sum(int(np.prod(a.shape)) * a.dtype.itemsize for a in weights)
    flops = 2 * B * (L * C * 2 * W_half + (W_half + SF) * H + 3 * H * H + H)
    cost = pl.CostEstimate(
        flops=flops,
        transcendentals=B,
        bytes_accessed=weight_bytes + (hist_flat.size + state.size + B) * 4,
    )

    return pl.pallas_call(
        kernel,
        out_shape=jax.ShapeDtypeStruct((B, 1), jnp.float32),
        grid=grid,
        in_specs=in_specs,
        out_specs=out_specs,
        compiler_params=pltpu.CompilerParams(
            dimension_semantics=("parallel",)),
        cost_estimate=cost,
    )(*args)


# ----------------------------------------------------------------------------
# Deterministic parameter init (PyTorch default uniform ±1/sqrt(fan_in))
# ----------------------------------------------------------------------------
def init_params(key, state_features, action_features, history_length):
    O, K = 32, 3
    C = state_features + action_features
    L_conv = history_length - K + 1
    P = (L_conv - 2) // 2 + 1
    H = 512
    in1 = O * P + state_features

    keys = jax.random.split(key, 12)

    def u(k, shape, fan_in):
        b = 1.0 / np.sqrt(fan_in)
        return jax.random.uniform(k, shape, jnp.float32, -b, b)

    Wc = u(keys[0], (O, C, K), C * K)
    bc = u(keys[1], (O,), C * K)
    W1 = u(keys[2], (H, in1), in1)
    b1 = u(keys[3], (H,), in1)
    W2 = u(keys[4], (H, H), H)
    b2 = u(keys[5], (H,), H)
    W3 = u(keys[6], (H, H), H)
    b3 = u(keys[7], (H,), H)
    W4 = u(keys[8], (H, H), H)
    b4 = u(keys[9], (H,), H)
    W5 = u(keys[10], (1, H), H)
    b5 = u(keys[11], (1,), H)
    return (Wc, bc, W1, b1, W2, b2, W3, b3, W4, b4, W5, b5)


# ----------------------------------------------------------------------------
# Pure-JAX reference (mirrors the PyTorch forward exactly, all f32)
# ----------------------------------------------------------------------------
def reference_forward(history, state, torch_params):
    Wc, bc, W1, b1, W2, b2, W3, b3, W4, b4, W5, b5 = torch_params
    B = history.shape[0]
    x = jnp.swapaxes(history, 1, 2)                               # (B, C, L)
    conv = jax.lax.conv_general_dilated(
        x, Wc, window_strides=(1,), padding="VALID",
        dimension_numbers=("NCH", "OIH", "NCH")) + bc[None, :, None]
    out_h = jnp.maximum(jnp.nan_to_num(conv), 0.0)                # (B, O, L_conv)
    P = (out_h.shape[2] - 2) // 2 + 1
    pooled = jnp.maximum(out_h[:, :, 0:2 * P:2], out_h[:, :, 1:2 * P:2])
    out = jnp.concatenate([pooled.reshape(B, -1), state], axis=1)
    out = jnp.maximum(jnp.nan_to_num(out @ W1.T + b1), 0.0)
    out = jnp.maximum(jnp.nan_to_num(out @ W2.T + b2), 0.0)
    out = jnp.maximum(jnp.nan_to_num(out @ W3.T + b3), 0.0)
    out = jnp.maximum(jnp.nan_to_num(out @ W4.T + b4), 0.0)
    out = jnp.nan_to_num(out @ W5.T + b5)
    return jax.nn.sigmoid(out)


# ----------------------------------------------------------------------------
if __name__ == "__main__":
    # Small shapes consistent with the module
    B = 2
    state_features = 4
    action_features = 4
    history_length = 8

    key = jax.random.PRNGKey(0)
    k_hist, k_state, k_params = jax.random.split(key, 3)

    history = jax.random.normal(
        k_hist, (B, history_length, state_features + action_features), jnp.float32)
    state = jax.random.normal(k_state, (B, state_features), jnp.float32)
    params = init_params(k_params, state_features, action_features, history_length)

    out = discriminator_forward(history, state, params)
    out = jax.block_until_ready(out)

    ref = jax.block_until_ready(reference_forward(history, state, params))
    assert out.shape == (B, 1)
    # bf16 matmul weights (f32 accumulation) => relaxed tolerance vs f32 ref.
    np.testing.assert_allclose(np.asarray(out), np.asarray(ref), rtol=3e-2, atol=3e-2)

    print("KERNEL_OK")
</pallas_src>

<mosaic_0001>
module attributes {stable_mosaic.version = 11 : i64} {
  func.func @kernel(%arg0: i32, %arg1: memref<2x64xf32, #tpu.memory_space<vmem>>, %arg2: memref<2x4xf32, #tpu.memory_space<vmem>>, %arg3: memref<64x256xbf16, #tpu.memory_space<vmem>>, %arg4: memref<1x256xf32, #tpu.memory_space<vmem>>, %arg5: memref<132x512xbf16, #tpu.memory_space<vmem>>, %arg6: memref<1x512xf32, #tpu.memory_space<vmem>>, %arg7: memref<512x512xbf16, #tpu.memory_space<vmem>>, %arg8: memref<1x512xf32, #tpu.memory_space<vmem>>, %arg9: memref<512x512xbf16, #tpu.memory_space<vmem>>, %arg10: memref<1x512xf32, #tpu.memory_space<vmem>>, %arg11: memref<512x512xbf16, #tpu.memory_space<vmem>>, %arg12: memref<1x512xf32, #tpu.memory_space<vmem>>, %arg13: memref<1x512xf32, #tpu.memory_space<vmem>>, %arg14: memref<1x1xf32, #tpu.memory_space<vmem>>, %arg15: memref<2x1xf32, #tpu.memory_space<vmem>>) attributes {dimension_semantics = [#tpu.dimension_semantics<parallel>], iteration_bounds = array<i64: 1>, scalar_prefetch = 0 : i64, scratch_operands = 0 : i64, tpu.core_type = #tpu.core_type<tc>, window_params = [{transform_indices = @transform_0, window_bounds = array<i64: 2, 64>}, {transform_indices = @transform_1, window_bounds = array<i64: 2, 4>}, {pipeline_mode = #tpu.pipeline_mode<synchronous>, transform_indices = @transform_2, window_bounds = array<i64: 64, 256>}, {pipeline_mode = #tpu.pipeline_mode<synchronous>, transform_indices = @transform_3, window_bounds = array<i64: 1, 256>}, {pipeline_mode = #tpu.pipeline_mode<synchronous>, transform_indices = @transform_4, window_bounds = array<i64: 132, 512>}, {pipeline_mode = #tpu.pipeline_mode<synchronous>, transform_indices = @transform_5, window_bounds = array<i64: 1, 512>}, {pipeline_mode = #tpu.pipeline_mode<synchronous>, transform_indices = @transform_6, window_bounds = array<i64: 512, 512>}, {pipeline_mode = #tpu.pipeline_mode<synchronous>, transform_indices = @transform_7, window_bounds = array<i64: 1, 512>}, {pipeline_mode = #tpu.pipeline_mode<synchronous>, transform_indices = @transform_8, window_bounds = array<i64: 512, 512>}, {pipeline_mode = #tpu.pipeline_mode<synchronous>, transform_indices = @transform_9, window_bounds = array<i64: 1, 512>}, {pipeline_mode = #tpu.pipeline_mode<synchronous>, transform_indices = @transform_10, window_bounds = array<i64: 512, 512>}, {pipeline_mode = #tpu.pipeline_mode<synchronous>, transform_indices = @transform_11, window_bounds = array<i64: 1, 512>}, {pipeline_mode = #tpu.pipeline_mode<synchronous>, transform_indices = @transform_12, window_bounds = array<i64: 1, 512>}, {pipeline_mode = #tpu.pipeline_mode<synchronous>, transform_indices = @transform_13, window_bounds = array<i64: 1, 1>}, {transform_indices = @transform_14, window_bounds = array<i64: 2, 1>}]} {
    %c0 = arith.constant 0 : index
    %c0_0 = arith.constant 0 : index
    %0 = vector.load %arg1[%c0, %c0_0] : memref<2x64xf32, #tpu.memory_space<vmem>>, vector<2x64xf32>
    %1 = arith.truncf %0 : vector<2x64xf32> to vector<2x64xbf16>
    %c0_1 = arith.constant 0 : index
    %c0_2 = arith.constant 0 : index
    %2 = vector.load %arg3[%c0_1, %c0_2] : memref<64x256xbf16, #tpu.memory_space<vmem>>, vector<64x256xbf16>
    %cst = arith.constant dense<0.000000e+00> : vector<2x256xf32>
    %3 = tpu.matmul %1, %2, %cst {dimension_numbers = #tpu.dot_dimension_numbers<[1], [0], [0], [1], [0, 0, 1, 1], [], []>} : vector<2x64xbf16>, vector<64x256xbf16>, vector<2x256xf32> -> vector<2x256xf32>
    %c0_3 = arith.constant 0 : index
    %c0_4 = arith.constant 0 : index
    %4 = vector.load %arg4[%c0_3, %c0_4] : memref<1x256xf32, #tpu.memory_space<vmem>>, vector<1x256xf32>
    %5 = vector.broadcast %4 : vector<1x256xf32> to vector<2x256xf32>
    %6 = arith.addf %3, %5 : vector<2x256xf32>
    %7 = arith.cmpf one, %6, %6 : vector<2x256xf32>
    %cst_5 = arith.constant 0.000000e+00 : f32
    %8 = vector.broadcast %cst_5 : f32 to vector<2x256xf32>
    %9 = arith.select %7, %8, %6 : vector<2x256xi1>, vector<2x256xf32>
    %cst_6 = arith.constant 0.000000e+00 : f32
    %10 = vector.broadcast %cst_6 : f32 to vector<2x256xf32>
    %11 = arith.maximumf %9, %10 : vector<2x256xf32>
    %cst_7 = arith.constant 3.40282347E+38 : f32
    %12 = vector.broadcast %cst_7 : f32 to vector<2x256xf32>
    %13 = arith.minimumf %11, %12 : vector<2x256xf32>
    %14 = vector.extract_strided_slice %13 {offsets = [0, 0], sizes = [2, 128], strides = [1, 1]} : vector<2x256xf32> to vector<2x128xf32>
    %15 = vector.extract_strided_slice %13 {offsets = [0, 128], sizes = [2, 128], strides = [1, 1]} : vector<2x256xf32> to vector<2x128xf32>
    %16 = arith.maximumf %14, %15 : vector<2x128xf32>
    %c0_8 = arith.constant 0 : index
    %c0_9 = arith.constant 0 : index
    %17 = vector.load %arg2[%c0_8, %c0_9] : memref<2x4xf32, #tpu.memory_space<vmem>>, vector<2x4xf32>
    %18 = tpu.concatenate %16, %17 in 1 : vector<2x128xf32>, vector<2x4xf32> -> vector<2x132xf32>
    %19 = arith.truncf %18 : vector<2x132xf32> to vector<2x132xbf16>
    %c0_10 = arith.constant 0 : index
    %c0_11 = arith.constant 0 : index
    %20 = vector.load %arg5[%c0_10, %c0_11] : memref<132x512xbf16, #tpu.memory_space<vmem>>, vector<132x512xbf16>
    %cst_12 = arith.constant dense<0.000000e+00> : vector<2x512xf32>
    %21 = tpu.matmul %19, %20, %cst_12 {dimension_numbers = #tpu.dot_dimension_numbers<[1], [0], [0], [1], [0, 0, 1, 1], [], []>} : vector<2x132xbf16>, vector<132x512xbf16>, vector<2x512xf32> -> vector<2x512xf32>
    %c0_13 = arith.constant 0 : index
    %c0_14 = arith.constant 0 : index
    %22 = vector.load %arg6[%c0_13, %c0_14] : memref<1x512xf32, #tpu.memory_space<vmem>>, vector<1x512xf32>
    %23 = vector.broadcast %22 : vector<1x512xf32> to vector<2x512xf32>
    %24 = arith.addf %21, %23 : vector<2x512xf32>
    %25 = arith.cmpf one, %24, %24 : vector<2x512xf32>
    %cst_15 = arith.constant 0.000000e+00 : f32
    %26 = vector.broadcast %cst_15 : f32 to vector<2x512xf32>
    %27 = arith.select %25, %26, %24 : vector<2x512xi1>, vector<2x512xf32>
    %cst_16 = arith.constant 0.000000e+00 : f32
    %28 = vector.broadcast %cst_16 : f32 to vector<2x512xf32>
    %29 = arith.maximumf %27, %28 : vector<2x512xf32>
    %cst_17 = arith.constant 3.40282347E+38 : f32
    %30 = vector.broadcast %cst_17 : f32 to vector<2x512xf32>
    %31 = arith.minimumf %29, %30 : vector<2x512xf32>
    %32 = arith.truncf %31 : vector<2x512xf32> to vector<2x512xbf16>
    %c0_18 = arith.constant 0 : index
    %c0_19 = arith.constant 0 : index
    %33 = vector.load %arg7[%c0_18, %c0_19] : memref<512x512xbf16, #tpu.memory_space<vmem>>, vector<512x512xbf16>
    %cst_20 = arith.constant dense<0.000000e+00> : vector<2x512xf32>
    %34 = tpu.matmul %32, %33, %cst_20 {dimension_numbers = #tpu.dot_dimension_numbers<[1], [0], [0], [1], [0, 0, 1, 1], [], []>} : vector<2x512xbf16>, vector<512x512xbf16>, vector<2x512xf32> -> vector<2x512xf32>
    %c0_21 = arith.constant 0 : index
    %c0_22 = arith.constant 0 : index
    %35 = vector.load %arg8[%c0_21, %c0_22] : memref<1x512xf32, #tpu.memory_space<vmem>>, vector<1x512xf32>
    %36 = vector.broadcast %35 : vector<1x512xf32> to vector<2x512xf32>
    %37 = arith.addf %34, %36 : vector<2x512xf32>
    %38 = arith.cmpf one, %37, %37 : vector<2x512xf32>
    %cst_23 = arith.constant 0.000000e+00 : f32
    %39 = vector.broadcast %cst_23 : f32 to vector<2x512xf32>
    %40 = arith.select %38, %39, %37 : vector<2x512xi1>, vector<2x512xf32>
    %cst_24 = arith.constant 0.000000e+00 : f32
    %41 = vector.broadcast %cst_24 : f32 to vector<2x512xf32>
    %42 = arith.maximumf %40, %41 : vector<2x512xf32>
    %cst_25 = arith.constant 3.40282347E+38 : f32
    %43 = vector.broadcast %cst_25 : f32 to vector<2x512xf32>
    %44 = arith.minimumf %42, %43 : vector<2x512xf32>
    %45 = arith.truncf %44 : vector<2x512xf32> to vector<2x512xbf16>
    %c0_26 = arith.constant 0 : index
    %c0_27 = arith.constant 0 : index
    %46 = vector.load %arg9[%c0_26, %c0_27] : memref<512x512xbf16, #tpu.memory_space<vmem>>, vector<512x512xbf16>
    %cst_28 = arith.constant dense<0.000000e+00> : vector<2x512xf32>
    %47 = tpu.matmul %45, %46, %cst_28 {dimension_numbers = #tpu.dot_dimension_numbers<[1], [0], [0], [1], [0, 0, 1, 1], [], []>} : vector<2x512xbf16>, vector<512x512xbf16>, vector<2x512xf32> -> vector<2x512xf32>
    %c0_29 = arith.constant 0 : index
    %c0_30 = arith.constant 0 : index
    %48 = vector.load %arg10[%c0_29, %c0_30] : memref<1x512xf32, #tpu.memory_space<vmem>>, vector<1x512xf32>
    %49 = vector.broadcast %48 : vector<1x512xf32> to vector<2x512xf32>
    %50 = arith.addf %47, %49 : vector<2x512xf32>
    %51 = arith.cmpf one, %50, %50 : vector<2x512xf32>
    %cst_31 = arith.constant 0.000000e+00 : f32
    %52 = vector.broadcast %cst_31 : f32 to vector<2x512xf32>
    %53 = arith.select %51, %52, %50 : vector<2x512xi1>, vector<2x512xf32>
    %cst_32 = arith.constant 0.000000e+00 : f32
    %54 = vector.broadcast %cst_32 : f32 to vector<2x512xf32>
    %55 = arith.maximumf %53, %54 : vector<2x512xf32>
    %cst_33 = arith.constant 3.40282347E+38 : f32
    %56 = vector.broadcast %cst_33 : f32 to vector<2x512xf32>
    %57 = arith.minimumf %55, %56 : vector<2x512xf32>
    %58 = arith.truncf %57 : vector<2x512xf32> to vector<2x512xbf16>
    %c0_34 = arith.constant 0 : index
    %c0_35 = arith.constant 0 : index
    %59 = vector.load %arg11[%c0_34, %c0_35] : memref<512x512xbf16, #tpu.memory_space<vmem>>, vector<512x512xbf16>
    %cst_36 = arith.constant dense<0.000000e+00> : vector<2x512xf32>
    %60 = tpu.matmul %58, %59, %cst_36 {dimension_numbers = #tpu.dot_dimension_numbers<[1], [0], [0], [1], [0, 0, 1, 1], [], []>} : vector<2x512xbf16>, vector<512x512xbf16>, vector<2x512xf32> -> vector<2x512xf32>
    %c0_37 = arith.constant 0 : index
    %c0_38 = arith.constant 0 : index
    %61 = vector.load %arg12[%c0_37, %c0_38] : memref<1x512xf32, #tpu.memory_space<vmem>>, vector<1x512xf32>
    %62 = vector.broadcast %61 : vector<1x512xf32> to vector<2x512xf32>
    %63 = arith.addf %60, %62 : vector<2x512xf32>
    %64 = arith.cmpf one, %63, %63 : vector<2x512xf32>
    %cst_39 = arith.constant 0.000000e+00 : f32
    %65 = vector.broadcast %cst_39 : f32 to vector<2x512xf32>
    %66 = arith.select %64, %65, %63 : vector<2x512xi1>, vector<2x512xf32>
    %cst_40 = arith.constant 0.000000e+00 : f32
    %67 = vector.broadcast %cst_40 : f32 to vector<2x512xf32>
    %68 = arith.maximumf %66, %67 : vector<2x512xf32>
    %cst_41 = arith.constant 3.40282347E+38 : f32
    %69 = vector.broadcast %cst_41 : f32 to vector<2x512xf32>
    %70 = arith.minimumf %68, %69 : vector<2x512xf32>
    %c0_42 = arith.constant 0 : index
    %c0_43 = arith.constant 0 : index
    %71 = vector.load %arg13[%c0_42, %c0_43] : memref<1x512xf32, #tpu.memory_space<vmem>>, vector<1x512xf32>
    %72 = vector.broadcast %71 : vector<1x512xf32> to vector<2x512xf32>
    %73 = arith.mulf %70, %72 : vector<2x512xf32>
    %cst_44 = arith.constant dense<0.000000e+00> : vector<2xf32>
    %74 = vector.multi_reduction <add>, %73, %cst_44 [1] : vector<2x512xf32> to vector<2xf32>
    %75 = vector.shape_cast %74 : vector<2xf32> to vector<2x1xf32>
    %c0_45 = arith.constant 0 : index
    %c0_46 = arith.constant 0 : index
    %76 = vector.load %arg14[%c0_45, %c0_46] : memref<1x1xf32, #tpu.memory_space<vmem>>, vector<1x1xf32>
    %77 = vector.broadcast %76 : vector<1x1xf32> to vector<2x1xf32>
    %78 = arith.addf %75, %77 : vector<2x1xf32>
    %79 = arith.cmpf one, %78, %78 : vector<2x1xf32>
    %cst_47 = arith.constant 0.000000e+00 : f32
    %80 = vector.broadcast %cst_47 : f32 to vector<2x1xf32>
    %81 = arith.select %79, %80, %78 : vector<2x1xi1>, vector<2x1xf32>
    %82 = arith.negf %81 : vector<2x1xf32>
    %83 = math.exp %82 : vector<2x1xf32>
    %cst_48 = arith.constant 1.000000e+00 : f32
    %84 = vector.broadcast %cst_48 : f32 to vector<2x1xf32>
    %85 = arith.addf %84, %83 : vector<2x1xf32>
    %86 = arith.divf %84, %85 : vector<2x1xf32>
    %c0_49 = arith.constant 0 : index
    %c0_50 = arith.constant 0 : index
    %87 = vector.load %arg15[%c0_49, %c0_50] : memref<2x1xf32, #tpu.memory_space<vmem>>, vector<2x1xf32>
    tpu.vector_store %arg15[%c0_49, %c0_50], %86 {strides = array<i32>} : memref<2x1xf32, #tpu.memory_space<vmem>>, vector<2x1xf32>,
    return
  }
  func.func @transform_0(%arg0: i32) -> (i32, i32) {
    %c0_i32 = arith.constant 0 : i32
    %c0_i32_0 = arith.constant 0 : i32
    return %arg0, %c0_i32 : i32, i32
  }
  func.func @transform_1(%arg0: i32) -> (i32, i32) {
    %c0_i32 = arith.constant 0 : i32
    %c0_i32_0 = arith.constant 0 : i32
    return %arg0, %c0_i32 : i32, i32
  }
  func.func @transform_2(%arg0: i32) -> (i32, i32) {
    %c0_i32 = arith.constant 0 : i32
    %c0_i32_0 = arith.constant 0 : i32
    %c0_i32_1 = arith.constant 0 : i32
    return %c0_i32, %c0_i32_0 : i32, i32
  }
  func.func @transform_3(%arg0: i32) -> (i32, i32) {
    %c0_i32 = arith.constant 0 : i32
    %c0_i32_0 = arith.constant 0 : i32
    %c0_i32_1 = arith.constant 0 : i32
    return %c0_i32, %c0_i32_0 : i32, i32
  }
  func.func @transform_4(%arg0: i32) -> (i32, i32) {
    %c0_i32 = arith.constant 0 : i32
    %c0_i32_0 = arith.constant 0 : i32
    %c0_i32_1 = arith.constant 0 : i32
    return %c0_i32, %c0_i32_0 : i32, i32
  }
  func.func @transform_5(%arg0: i32) -> (i32, i32) {
    %c0_i32 = arith.constant 0 : i32
    %c0_i32_0 = arith.constant 0 : i32
    %c0_i32_1 = arith.constant 0 : i32
    return %c0_i32, %c0_i32_0 : i32, i32
  }
  func.func @transform_6(%arg0: i32) -> (i32, i32) {
    %c0_i32 = arith.constant 0 : i32
    %c0_i32_0 = arith.constant 0 : i32
    %c0_i32_1 = arith.constant 0 : i32
    return %c0_i32, %c0_i32_0 : i32, i32
  }
  func.func @transform_7(%arg0: i32) -> (i32, i32) {
    %c0_i32 = arith.constant 0 : i32
    %c0_i32_0 = arith.constant 0 : i32
    %c0_i32_1 = arith.constant 0 : i32
    return %c0_i32, %c0_i32_0 : i32, i32
  }
  func.func @transform_8(%arg0: i32) -> (i32, i32) {
    %c0_i32 = arith.constant 0 : i32
    %c0_i32_0 = arith.constant 0 : i32
    %c0_i32_1 = arith.constant 0 : i32
    return %c0_i32, %c0_i32_0 : i32, i32
  }
  func.func @transform_9(%arg0: i32) -> (i32, i32) {
    %c0_i32 = arith.constant 0 : i32
    %c0_i32_0 = arith.constant 0 : i32
    %c0_i32_1 = arith.constant 0 : i32
    return %c0_i32, %c0_i32_0 : i32, i32
  }
  func.func @transform_10(%arg0: i32) -> (i32, i32) {
    %c0_i32 = arith.constant 0 : i32
    %c0_i32_0 = arith.constant 0 : i32
    %c0_i32_1 = arith.constant 0 : i32
    return %c0_i32, %c0_i32_0 : i32, i32
  }
  func.func @transform_11(%arg0: i32) -> (i32, i32) {
    %c0_i32 = arith.constant 0 : i32
    %c0_i32_0 = arith.constant 0 : i32
    %c0_i32_1 = arith.constant 0 : i32
    return %c0_i32, %c0_i32_0 : i32, i32
  }
  func.func @transform_12(%arg0: i32) -> (i32, i32) {
    %c0_i32 = arith.constant 0 : i32
    %c0_i32_0 = arith.constant 0 : i32
    %c0_i32_1 = arith.constant 0 : i32
    return %c0_i32, %c0_i32_0 : i32, i32
  }
  func.func @transform_13(%arg0: i32) -> (i32, i32) {
    %c0_i32 = arith.constant 0 : i32
    %c0_i32_0 = arith.constant 0 : i32
    %c0_i32_1 = arith.constant 0 : i32
    return %c0_i32, %c0_i32_0 : i32, i32
  }
  func.func @transform_14(%arg0: i32) -> (i32, i32) {
    %c0_i32 = arith.constant 0 : i32
    %c0_i32_0 = arith.constant 0 : i32
    return %arg0, %c0_i32 : i32, i32
  }
}

</mosaic_0001>

<bundles_post_ra>
// kernel: tpu_custom_call.1
= control target key start
LH: loop header
LB: loop body
LE: loop exit
PB: predicated region body
PF: predicated region fallthrough
CT: control target
= control target key end

     0   :  { %s5158_s0 = inlined_call_operand.vmem [shape: f32[2,64], index: 0, kind: input, shape index: {}]   ;;  %s5159_s1 = inlined_call_operand.hbm [shape: f32[2,4], index: 1, kind: input, shape index: {}]   ;;  %s5160_s2 = inlined_call_operand.hbm [shape: bf16[64,256], index: 2, kind: input, shape index: {}]   ;;  %s5161_s3 = inlined_call_operand.hbm [shape: f32[1,256], index: 3, kind: input, shape index: {}]   ;;  %s5162_s4 = inlined_call_operand.hbm [shape: bf16[132,512], index: 4, kind: input, shape index: {}]   ;;  %s5163_s5 = inlined_call_operand.vmem [shape: f32[1,512], index: 5, kind: input, shape index: {}]   ;;  %s5164_s6 = inlined_call_operand.hbm [shape: bf16[512,512], index: 6, kind: input, shape index: {}]   ;;  %s5165_s7 = inlined_call_operand.vmem [shape: f32[1,512], index: 7, kind: input, shape index: {}]   ;;  %s5166_s8 = inlined_call_operand.hbm [shape: bf16[512,512], index: 8, kind: input, shape index: {}]   ;;  %s5167_s9 = inlined_call_operand.vmem [shape: f32[1,512], index: 9, kind: input, shape index: {}]   ;;  %s5168_s10 = inlined_call_operand.hbm [shape: bf16[512,512], index: 10, kind: input, shape index: {}]   ;;  %s5169_s11 = inlined_call_operand.vmem [shape: f32[1,512], index: 11, kind: input, shape index: {}]   ;;  %s5170_s12 = inlined_call_operand.vmem [shape: f32[1,512], index: 12, kind: input, shape index: {}]   ;;  %s5171_s13 = inlined_call_operand.<no memory space> [shape: f32[1,1], index: 13, kind: input, shape index: {}]   ;;  %s5172_s14 = inlined_call_operand.vmem [shape: f32[2,1], index: 14, kind: output, shape index: {}]  }
   0x1   :  { %v19_v0 = vstv %s5171_s13 }
   0x2   :  { %20 = vst [vmem:[#allocation2] sm:$0x1] %v19_v0 }
   0x3   :  { %21 = vsyncpa [#allocation4], 0 }
   0x4   :  { %22 = vsyncpa [#allocation6], 0 }
   0x5   :  { %23 = vsyncpa [#allocation9], 0 }
   0x6   :  { %24 = vsyncpa [#allocation12], 0  ;;  %s4873_s15 = smov [#allocation5]   ;;  %s4711_s19 = scalar_lea.hbm %s5160_s2, 1024 }
   0x7   :  { %s42_s16 = sshll.u32 %s4873_s15, 4  ;;  %p4712_p0 = scmp.ne.s32.totalorder %s5160_s2, %s4711_s19  ;;  %s43_s16 = int_to_ptr.vmem [resolvable:$true] %s42_s16 }
   0x8   :  { %p4715_p1 = scmp.lt.u32.totalorder %s4711_s19, %s5160_s2 }
   0xa   :  { %p4717_p2 = pnand %p4715_p1, %p4712_p0 }
   0xc   :  { %4720 = shalt.err (!%p4717_p2)
}
   0xd   :  { %s4721_s13 = scalar_lea.vmem %s43_s16, 1024  ;;  %p4726_p4 = scmp.lt.s32.totalorder %s43_s16, %s43_s16 }
   0xe   :  { %p4722_p3 = scmp.ne.s32.totalorder %s43_s16, %s4721_s13  ;;  %p4727_p5 = scmp.lt.s32.totalorder %s4721_s13, %s4721_s13 }
  0x10   :  { %p4728_p6 = por %p4727_p5, %p4726_p4 }
  0x12   :  { %p4729_p7 = pnand %p4728_p6, %p4722_p3 }
  0x14   :  { %4732 = shalt.err (!%p4729_p7)
}
  0x15   :  { %s4874_s24 = smov 128   ;;  %s4875_s25 = smov 8  }
  0x16   :  { %48 = dma.hbm_to_vmem [thread:$0]  %s5160_s2, 1024, %s43_s16, [#allocation6], %s4874_s24, %s4874_s24, %s4875_s25  }
  0x17   :  { %s4876_s28 = smov [#allocation8]   ;;  %s4733_s17 = scalar_lea.hbm %s5162_s4, 4352 }
  0x18   :  { %s64_s29 = sshll.u32 %s4876_s28, 4  ;;  %p4734_p8 = scmp.ne.s32.totalorder %s5162_s4, %s4733_s17  ;;  %s65_s29 = int_to_ptr.vmem [resolvable:$true] %s64_s29 }
  0x19   :  { %p4737_p9 = scmp.lt.u32.totalorder %s4733_s17, %s5162_s4 }
  0x1b   :  { %p4739_p10 = pnand %p4737_p9, %p4734_p8 }
  0x1d   :  { %4742 = shalt.err (!%p4739_p10)
}
  0x1e   :  { %s4743_s22 = scalar_lea.vmem %s65_s29, 4352  ;;  %p4748_p12 = scmp.lt.s32.totalorder %s65_s29, %s65_s29 }
  0x1f   :  { %p4744_p11 = scmp.ne.s32.totalorder %s65_s29, %s4743_s22  ;;  %p4749_p13 = scmp.lt.s32.totalorder %s4743_s22, %s4743_s22 }
  0x21   :  { %p4750_p0 = por %p4749_p13, %p4748_p12 }
  0x23   :  { %p4751_p1 = pnand %p4750_p0, %p4744_p11 }
  0x25   :  { %4754 = shalt.err (!%p4751_p1)
}
  0x26   :  { %s4877_s2 = smov 256   ;;  %s4878_s16 = smov 16  }
  0x27   :  { %70 = dma.hbm_to_vmem [thread:$0]  %s5162_s4, 4352, %s65_s29, [#allocation9], %s4877_s2, %s4877_s2, %s4878_s16  }
  0x28   :  { %s4879_s24 = smov [#allocation11]   ;;  %s4880_s26 = smov [#allocation3]  }
  0x29   :  { %s92_s25 = sshll.u32 %s4879_s24, 4  ;;  %s33_s27 = sshll.u32 %s4880_s26, 4  ;;  %s93_s25 = int_to_ptr.vmem [resolvable:$true] %s92_s25  ;;  %s34_s27 = int_to_ptr.vmem [resolvable:$true] %s33_s27 }
  0x2a   :  { %s4755_s15 = scalar_lea.hbm %s5166_s8, 16384 }
  0x2b   :  { %p4756_p2 = scmp.ne.s32.totalorder %s5166_s8, %s4755_s15  ;;  %p4759_p3 = scmp.lt.u32.totalorder %s4755_s15, %s5166_s8 }
  0x2d   :  { %p4761_p4 = pnand %p4759_p3, %p4756_p2 }
  0x2f   :  { %4764 = shalt.err (!%p4761_p4)
}
  0x30   :  { %s4765_s4 = scalar_lea.vmem %s93_s25, 16384  ;;  %p4770_p6 = scmp.lt.s32.totalorder %s93_s25, %s93_s25 }
  0x31   :  { %p4766_p5 = scmp.ne.s32.totalorder %s93_s25, %s4765_s4  ;;  %p4771_p7 = scmp.lt.s32.totalorder %s4765_s4, %s4765_s4 }
  0x33   :  { %p4772_p8 = por %p4771_p7, %p4770_p6 }
  0x35   :  { %p4773_p9 = pnand %p4772_p8, %p4766_p5 }
  0x37   :  { %4776 = shalt.err (!%p4773_p9)
}
  0x38   :  { %98 = dma.hbm_to_vmem [thread:$0]  %s5166_s8, 16384, %s93_s25, [#allocation12], %s4877_s2, %s4877_s2, %s4878_s16  }
  0x39   :  { %s4777_s13 = scalar_lea.hbm %s5159_s1, 32 }
  0x3a   :  { %p4778_p10 = scmp.ne.s32.totalorder %s5159_s1, %s4777_s13  ;;  %p4781_p11 = scmp.lt.u32.totalorder %s4777_s13, %s5159_s1 }
  0x3c   :  { %p4783_p12 = pnand %p4781_p11, %p4778_p10 }
  0x3e   :  { %4786 = shalt.err (!%p4783_p12)
}
  0x3f   :  { %s4787_s15 = scalar_lea.vmem %s34_s27, 32  ;;  %p4792_p0 = scmp.lt.s32.totalorder %s34_s27, %s34_s27 }
  0x40   :  { %p4788_p13 = scmp.ne.s32.totalorder %s34_s27, %s4787_s15  ;;  %p4793_p1 = scmp.lt.s32.totalorder %s4787_s15, %s4787_s15 }
  0x42   :  { %p4794_p2 = por %p4793_p1, %p4792_p0 }
  0x44   :  { %p4795_p3 = pnand %p4794_p2, %p4788_p13 }
  0x46   :  { %4798 = shalt.err (!%p4795_p3)
}
  0x47   :  { %36 = dma.hbm_to_vmem [thread:$0]  %s5159_s1, 32, %s34_s27, [#allocation4]  }
  0x48   :  { %s4881_s17 = smov [#allocation7]   ;;  %s4882_s19 = smov [#allocation10]  }
  0x49   :  { %s55_s18 = sshll.u32 %s4881_s17, 4  ;;  %s78_s20 = sshll.u32 %s4882_s19, 4  ;;  %s56_s18 = int_to_ptr.vmem [resolvable:$true] %s55_s18  ;;  %s5017_s20 = int_to_ptr.vmem [resolvable:$true] %s78_s20 }
  0x4a   :  { %s4799_s21 = scalar_lea.hbm %s5161_s3, 32 }
  0x4b   :  { %p4800_p4 = scmp.ne.s32.totalorder %s5161_s3, %s4799_s21  ;;  %p4803_p5 = scmp.lt.u32.totalorder %s4799_s21, %s5161_s3 }
  0x4d   :  { %p4805_p6 = pnand %p4803_p5, %p4800_p4 }
  0x4f   :  { %4808 = shalt.err (!%p4805_p6)
}
  0x50   :  { %s4809_s1 = scalar_lea.vmem %s56_s18, 32  ;;  %p4814_p8 = scmp.lt.s32.totalorder %s56_s18, %s56_s18 }
  0x51   :  { %p4810_p7 = scmp.ne.s32.totalorder %s56_s18, %s4809_s1  ;;  %p4815_p9 = scmp.lt.s32.totalorder %s4809_s1, %s4809_s1 }
  0x53   :  { %p4816_p10 = por %p4815_p9, %p4814_p8 }
  0x55   :  { %p4817_p11 = pnand %p4816_p10, %p4810_p7 }
  0x57   :  { %4820 = shalt.err (!%p4817_p11)
}
  0x58   :  { %58 = dma.hbm_to_vmem [thread:$0]  %s5161_s3, 32, %s56_s18, [#allocation6]  }
  0x59   :  { %s4821_s15 = scalar_lea.hbm %s5164_s6, 16384 }
  0x5a   :  { %p4822_p12 = scmp.ne.s32.totalorder %s5164_s6, %s4821_s15  ;;  %p4825_p13 = scmp.lt.u32.totalorder %s4821_s15, %s5164_s6 }
  0x5c   :  { %p4827_p0 = pnand %p4825_p13, %p4822_p12 }
  0x5e   :  { %4830 = shalt.err (!%p4827_p0)
}
  0x5f   :  { %s4831_s4 = scalar_lea.vmem %s5017_s20, 16384  ;;  %p4836_p2 = scmp.lt.s32.totalorder %s5017_s20, %s5017_s20 }
  0x60   :  { %p4832_p1 = scmp.ne.s32.totalorder %s5017_s20, %s4831_s4  ;;  %p4837_p3 = scmp.lt.s32.totalorder %s4831_s4, %s4831_s4 }
  0x62   :  { %p4838_p4 = por %p4837_p3, %p4836_p2 }
  0x64   :  { %p4839_p5 = pnand %p4838_p4, %p4832_p1 }
  0x66   :  { %4842 = shalt.err (!%p4839_p5)
}
  0x67   :  { %84 = dma.hbm_to_vmem [thread:$0]  %s5164_s6, 16384, %s5017_s20, [#allocation9], %s4877_s2, %s4877_s2, %s4878_s16  }
  0x68   :  { %s4883_s29 = smov [#allocation13]   ;;  %s4843_s13 = scalar_lea.hbm %s5168_s10, 16384 }
  0x69   :  { %s106_s21 = sshll.u32 %s4883_s29, 4  ;;  %p4844_p6 = scmp.ne.s32.totalorder %s5168_s10, %s4843_s13  ;;  %s107_s21 = int_to_ptr.vmem [resolvable:$true] %s106_s21 }
  0x6a   :  { %p4847_p7 = scmp.lt.u32.totalorder %s4843_s13, %s5168_s10 }
  0x6c   :  { %p4849_p8 = pnand %p4847_p7, %p4844_p6 }
  0x6e   :  { %4852 = shalt.err (!%p4849_p8)
}
  0x6f   :  { %s4853_s28 = scalar_lea.vmem %s107_s21, 16384  ;;  %p4858_p10 = scmp.lt.s32.totalorder %s107_s21, %s107_s21 }
  0x70   :  { %p4854_p9 = scmp.ne.s32.totalorder %s107_s21, %s4853_s28  ;;  %p4859_p11 = scmp.lt.s32.totalorder %s4853_s28, %s4853_s28 }
  0x72   :  { %p4860_p12 = por %p4859_p11, %p4858_p10 }
  0x74   :  { %p4861_p13 = pnand %p4860_p12, %p4854_p9 }
  0x76   :  { %4864 = shalt.err (!%p4861_p13)
}
  0x77   :  { %112 = dma.hbm_to_vmem [thread:$0]  %s5168_s10, 16384, %s107_s21, [#allocation12], %s4877_s2, %s4877_s2, %s4878_s16  }
  0x78   :  { %4865 = dma.done.wait [#allocation4], 32  }
  0x79   :  { %4866 = vsyncadd [#allocation4], 4294967264 }
  0x7a   :  { %4867 = dma.done.wait [#allocation6], 1056  }
  0x7b   :  { %4868 = vsyncadd [#allocation6], 4294966240 }
  0x7c   :  { %4869 = dma.done.wait [#allocation9], 20736  }
  0x7d   :  { %4870 = vsyncadd [#allocation9], 4294946560 }
  0x7e   :  { %4871 = dma.done.wait [#allocation12], 32768  }
  0x7f   :  { %4872 = vsyncadd [#allocation12], 4294934528  ;;  %v4884_v1 = vmov 0   ;;  %v4067_v2 = vld [vmem:[#allocation5 + $0x4] ss:$8 sps:$4 sm:$0xff]   ;;  %vm203_vm0 = vcmask 523264   ;;  %v153_v56 = vlaneseq }
  0x80   :  { %239 = vmatprep.mubr.bf16.mxu0 %v4884_v1  ;;  %v4069_v3 = vld [vmem:[#allocation5] ss:$8 sps:$4 sm:$0xff]   ;;  %207 = vmatprep.subr.bf16.mxu0 %v4067_v2  ;;  %v4070_v4 = vld [vmem:[#allocation5 + $0x14] ss:$8 sps:$4 sm:$0xff]   ;;  %v4072_v5 = vld [vmem:[#allocation5 + $0x10] ss:$8 sps:$4 sm:$0xff]  }
  0x81   :  { %208 = vmatpush1.bf16.msra.mxu0 %v4069_v3  ;;  %v4073_v6 = vld [vmem:[#allocation5 + $0x24] ss:$8 sps:$4 sm:$0xff]   ;;  %v4075_v8 = vld [vmem:[#allocation5 + $0x20] ss:$8 sps:$4 sm:$0xff]   ;;  %v4076_v9 = vld [vmem:[#allocation5 + $0x34] ss:$8 sps:$4 sm:$0xff]  }
  0x82   :  { %209 = vmatprep.subr.bf16.mxu0 %v4070_v4  ;;  %v4079_v7 = vld [vmem:[#allocation8 + $0x4] ss:$16 sps:$4 sm:$0xff]   ;;  %v4084_v10 = vld [vmem:[#allocation8] ss:$16 sps:$4 sm:$0xff]   ;;  %v141_v13 = vld [vmem:[%s5158_s0] sm:$0x3] }
  0x83   :  { %503 = vmatprep.subr.bf16.mxu1 %v4079_v7  ;;  %v4085_v11 = vld [vmem:[#allocation8 + $0x24] ss:$16 sps:$4 sm:$0xff]   ;;  %v4090_v14 = vld [vmem:[#allocation8 + $0x20] ss:$16 sps:$4 sm:$0xff]   ;;  %v4083_v16 = vld [vmem:[#allocation8 + $0xc] ss:$16 sps:$4 sm:$0xff]   ;;  %v142_v17 = vpack.c.bf16 %v141_v13, %v141_v13 }
  0x84   :  { %v4078_v12 = vld [vmem:[#allocation5 + $0x30] ss:$8 sps:$4 sm:$0xff]   ;;  %504 = vmatpush1.bf16.msra.mxu1 %v4084_v10  ;;  %v292_v44 = vld [vmem:[#allocation8 + $0x100] sm:$0x33]  ;;  %v293_v45 = vld [vmem:[#allocation8 + $0x108] sm:$0x33] }
  0x85   :  { %210 = vmatpush1.bf16.msra.mxu0 %v4072_v5  ;;  %505 = vmatprep.subr.bf16.mxu1 %v4085_v11  ;;  %v4091_v15 = vld [vmem:[#allocation8 + $0x44] ss:$16 sps:$4 sm:$0xff]   ;;  %v4096_v18 = vld [vmem:[#allocation8 + $0x40] ss:$16 sps:$4 sm:$0xff]   ;;  %v4081_v19 = vld [vmem:[#allocation8 + $0x8] ss:$16 sps:$4 sm:$0xff]   ;;  %v3626_v46 = vcombine.high %v292_v44, %v292_v44  ;;  %v3628_v47 = vcombine.high %v293_v45, %v293_v45  ;;  %v3625_v48 = vcombine.low %v292_v44, %v292_v44 }
  0x86   :  { %211 = vmatprep.subr.bf16.mxu0 %v4073_v6  ;;  %v4097_v20 = vld [vmem:[#allocation8 + $0x64] ss:$16 sps:$4 sm:$0xff]   ;;  %v4089_v21 = vld [vmem:[#allocation8 + $0x2c] ss:$16 sps:$4 sm:$0xff]   ;;  %v4087_v22 = vld [vmem:[#allocation8 + $0x28] ss:$16 sps:$4 sm:$0xff]   ;;  %v3627_v50 = vcombine.low %v293_v45, %v293_v45 }
  0x87   :  { %v4102_v23 = vld [vmem:[#allocation8 + $0x60] ss:$16 sps:$4 sm:$0xff]   ;;  %v4103_v24 = vld [vmem:[#allocation8 + $0x84] ss:$16 sps:$4 sm:$0xff]   ;;  %v4095_v25 = vld [vmem:[#allocation8 + $0x4c] ss:$16 sps:$4 sm:$0xff]  }
  0x88   :  { %506 = vmatpush1.bf16.msra.mxu1 %v4090_v14  ;;  %v4093_v26 = vld [vmem:[#allocation8 + $0x48] ss:$16 sps:$4 sm:$0xff]   ;;  %v4108_v27 = vld [vmem:[#allocation8 + $0x80] ss:$16 sps:$4 sm:$0xff]   ;;  %v4109_v28 = vld [vmem:[#allocation8 + $0xa4] ss:$16 sps:$4 sm:$0xff]  }
  0x89   :  { %212 = vmatpush1.bf16.msra.mxu0 %v4075_v8  ;;  %507 = vmatprep.subr.bf16.mxu1 %v4091_v15  ;;  %v4101_v29 = vld [vmem:[#allocation8 + $0x6c] ss:$16 sps:$4 sm:$0xff]   ;;  %v4114_v30 = vld [vmem:[#allocation8 + $0xa0] ss:$16 sps:$4 sm:$0xff]   ;;  %v4099_v31 = vld [vmem:[#allocation8 + $0x68] ss:$16 sps:$4 sm:$0xff]  }
  0x8a   :  { %213 = vmatprep.subr.bf16.mxu0 %v4076_v9  ;;  %v4107_v32 = vld [vmem:[#allocation8 + $0x8c] ss:$16 sps:$4 sm:$0xff]   ;;  %v4105_v33 = vld [vmem:[#allocation8 + $0x88] ss:$16 sps:$4 sm:$0xff]   ;;  %v4115_v36 = vld [vmem:[#allocation8 + $0xc4] ss:$16 sps:$4 sm:$0xff]  }
  0x8b   :  { %v4113_v34 = vld [vmem:[#allocation8 + $0xac] ss:$16 sps:$4 sm:$0xff]   ;;  %v4111_v35 = vld [vmem:[#allocation8 + $0xa8] ss:$16 sps:$4 sm:$0xff]   ;;  %v4120_v39 = vld [vmem:[#allocation8 + $0xc0] ss:$16 sps:$4 sm:$0xff]  }
  0x8c   :  { %508 = vmatpush1.bf16.msra.mxu1 %v4096_v18  ;;  %v4119_v37 = vld [vmem:[#allocation8 + $0xcc] ss:$16 sps:$4 sm:$0xff]   ;;  %v4117_v38 = vld [vmem:[#allocation8 + $0xc8] ss:$16 sps:$4 sm:$0xff]   ;;  %v4121_v40 = vld [vmem:[#allocation8 + $0xe4] ss:$16 sps:$4 sm:$0xff]  }
  0x8d   :  { %214 = vmatpush1.bf16.msra.mxu0 %v4078_v12  ;;  %509 = vmatprep.subr.bf16.mxu1 %v4097_v20  ;;  %v4125_v41 = vld [vmem:[#allocation8 + $0xec] ss:$16 sps:$4 sm:$0xff]   ;;  %v4123_v42 = vld [vmem:[#allocation8 + $0xe8] ss:$16 sps:$4 sm:$0xff]   ;;  %v4126_v43 = vld [vmem:[#allocation8 + $0xe0] ss:$16 sps:$4 sm:$0xff]  }
  0x8e   :  { %544 = vmatprep.subr.bf16.mxu0 %v4083_v16  ;;  %vm490_vm1 = vcmask 1041408   ;;  %v257_v49 = vld [vmem:[#allocation3] sm:$0x3]  ;;  %vm486_vm2 = vcmask 31744   ;;  %v4133_v54 = vld [vmem:[#allocation10 + $0x4] ss:$16 sps:$4 sm:$0xff]  }
  0x8f   :  { %v259_v51 = vpack.c.bf16 %v257_v49, %v257_v49  ;;  %v492_v52 = vsel %vm490_vm1, %v3625_v48, 0  ;;  %v498_v53 = vsel %vm490_vm1, %v3627_v50, 0  ;;  %v4136_v55 = vld [vmem:[#allocation10 + $0xc] ss:$16 sps:$4 sm:$0xff]   ;;  %v5073_v57 = vshrl.u32 %v153_v56, 7 }
  0x90   :  { %3592 = vmatmul.mubr.msk.bf16.vlgmr.msra.gmra.mrb[0].mxu0 %vm203_vm0, %v142_v17  ;;  %510 = vmatpush1.bf16.msra.mxu1 %v4102_v23  ;;  %v151_v59 = vld [vmem:[#allocation7] sm:$0x3]  ;;  %v4131_v12 = vld [vmem:[#allocation10] ss:$16 sps:$4 sm:$0xff]   ;;  %v4134_v13 = vld [vmem:[#allocation10 + $0x8] ss:$16 sps:$4 sm:$0xff]  }
  0x91   :  { %545 = vmatpush1.bf16.msra.mxu0 %v4081_v19  ;;  %511 = vmatprep.subr.bf16.mxu1 %v4103_v24  ;;  %v5076_v58 = vsub.s32 0, %v5073_v57  ;;  %v5079_v60 = vsub.s32 1, %v5073_v57  ;;  %v4139_v15 = vld [vmem:[#allocation10 + $0x24] ss:$16 sps:$4 sm:$0xff]   ;;  %v4142_v16 = vld [vmem:[#allocation10 + $0x2c] ss:$16 sps:$4 sm:$0xff]  }
  0x92   :  { %546 = vmatprep.subr.bf16.mxu0 %v4089_v21  ;;  %3630 = vmatprep.mubr.msk.bf16.mxu1 %vm486_vm2, %v259_v51  ;;  %v4137_v17 = vld [vmem:[#allocation10 + $0x20] ss:$16 sps:$4 sm:$0xff]   ;;  %v4140_v18 = vld [vmem:[#allocation10 + $0x28] ss:$16 sps:$4 sm:$0xff]   ;;  %v4145_v19 = vld [vmem:[#allocation10 + $0x44] ss:$16 sps:$4 sm:$0xff]  }
  0x93   :  { %3632 = vmatprep.mubr.msk.bf16.mxu0 %vm486_vm2, %v259_v51  ;;  %v156_v61 = vrot.slane %v151_v59, %v5076_v58  ;;  %v160_v62 = vrot.slane %v151_v59, %v5079_v60  ;;  %v4148_v20 = vld [vmem:[#allocation10 + $0x4c] ss:$16 sps:$4 sm:$0xff]   ;;  %v4143_v21 = vld [vmem:[#allocation10 + $0x40] ss:$16 sps:$4 sm:$0xff]   ;;  %v4151_v23 = vld [vmem:[#allocation10 + $0x64] ss:$16 sps:$4 sm:$0xff]  }
  0x94   :  { %512 = vmatpush1.bf16.msra.mxu1 %v4108_v27  ;;  %v4154_v24 = vld [vmem:[#allocation10 + $0x6c] ss:$16 sps:$4 sm:$0xff]   ;;  %v4157_v27 = vld [vmem:[#allocation10 + $0x84] ss:$16 sps:$4 sm:$0xff]   ;;  %v4179_v45 = vld [vmem:[#allocation10 + $0x100] ss:$16 sps:$4 sm:$0xff]  }
  0x95   :  { %547 = vmatpush1.bf16.msra.mxu0 %v4087_v22  ;;  %513 = vmatprep.subr.bf16.mxu1 %v4109_v28  ;;  %v4146_v22 = vld [vmem:[#allocation10 + $0x48] ss:$16 sps:$4 sm:$0xff]   ;;  %v4160_v28 = vld [vmem:[#allocation10 + $0x8c] ss:$16 sps:$4 sm:$0xff]   ;;  %v4185_v49 = vld [vmem:[#allocation10 + $0x120] ss:$16 sps:$4 sm:$0xff]  }
  0x96   :  { %548 = vmatprep.subr.bf16.mxu0 %v4095_v25  ;;  %v4149_v25 = vld [vmem:[#allocation10 + $0x60] ss:$16 sps:$4 sm:$0xff]   ;;  %v4184_v44 = vld [vmem:[#allocation10 + $0x10c] ss:$16 sps:$4 sm:$0xff]   ;;  %v4188_v50 = vld [vmem:[#allocation10 + $0x128] ss:$16 sps:$4 sm:$0xff]  }
  0x97   :  { %v4190_v48 = vld [vmem:[#allocation10 + $0x12c] ss:$16 sps:$4 sm:$0xff]   ;;  %v4193_v51 = vld [vmem:[#allocation10 + $0x144] ss:$16 sps:$4 sm:$0xff]   ;;  %v4197_v59 = vld [vmem:[#allocation10 + $0x160] ss:$16 sps:$4 sm:$0xff]  }
  0x98   :  { %514 = vmatpush1.bf16.msra.mxu1 %v4114_v30  ;;  %v4158_v30 = vld [vmem:[#allocation10 + $0x88] ss:$16 sps:$4 sm:$0xff]   ;;  %v4202_v56 = vld [vmem:[#allocation10 + $0x16c] ss:$16 sps:$4 sm:$0xff]  }
  0x99   :  { %549 = vmatpush1.bf16.msra.mxu0 %v4093_v26  ;;  %515 = vmatprep.subr.bf16.mxu1 %v4115_v36  ;;  %v4152_v26 = vld [vmem:[#allocation10 + $0x68] ss:$16 sps:$4 sm:$0xff]   ;;  %v4172_v36 = vld [vmem:[#allocation10 + $0xcc] ss:$16 sps:$4 sm:$0xff]  }
  0x9a   :  { %550 = vmatprep.subr.bf16.mxu0 %v4101_v29  ;;  %v4155_v29 = vld [vmem:[#allocation10 + $0x80] ss:$16 sps:$4 sm:$0xff]  }
  0x9c   :  { %516 = vmatpush1.bf16.msra.mxu1 %v4120_v39  ;;  %v4175_v39 = vld [vmem:[#allocation10 + $0xe4] ss:$16 sps:$4 sm:$0xff]  }
  0x9d   :  { %551 = vmatpush1.bf16.msra.mxu0 %v4099_v31  ;;  %517 = vmatprep.subr.bf16.mxu1 %v4121_v40  ;;  %v4163_v31 = vld [vmem:[#allocation10 + $0xa4] ss:$16 sps:$4 sm:$0xff]   ;;  %v4178_v40 = vld [vmem:[#allocation10 + $0xec] ss:$16 sps:$4 sm:$0xff]  }
  0x9e   :  { %552 = vmatprep.subr.bf16.mxu0 %v4107_v32  ;;  %v4166_v32 = vld [vmem:[#allocation10 + $0xac] ss:$16 sps:$4 sm:$0xff]  }
  0xa0   :  { %518 = vmatpush1.bf16.msra.mxu1 %v4126_v43  ;;  %v4181_v43 = vld [vmem:[#allocation10 + $0x104] ss:$16 sps:$4 sm:$0xff]  }
  0xa1   :  { %553 = vmatpush1.bf16.msra.mxu0 %v4105_v33  ;;  %3629 = vmatprep.subr.msk.bf16.mxu1 %vm490_vm1, %v3626_v46  ;;  %v4161_v33 = vld [vmem:[#allocation10 + $0xa0] ss:$16 sps:$4 sm:$0xff]   ;;  %v4182_v46 = vld [vmem:[#allocation10 + $0x108] ss:$16 sps:$4 sm:$0xff]  }
  0xa2   :  { %554 = vmatprep.subr.bf16.mxu0 %v4113_v34  ;;  %v4164_v34 = vld [vmem:[#allocation10 + $0xa8] ss:$16 sps:$4 sm:$0xff]  }
  0xa4   :  { %520 = vmatpush1.bf16.msra.mxu1 %v492_v52  ;;  %v4196_v52 = vld [vmem:[#allocation10 + $0x14c] ss:$16 sps:$4 sm:$0xff]  }
  0xa5   :  { %555 = vmatpush1.bf16.msra.mxu0 %v4111_v35  ;;  %1395 = vmatprep.subr.bf16.mxu1 %v4133_v54  ;;  %v4169_v35 = vld [vmem:[#allocation10 + $0xc4] ss:$16 sps:$4 sm:$0xff]   ;;  %v4194_v54 = vld [vmem:[#allocation10 + $0x148] ss:$16 sps:$4 sm:$0xff]  }
  0xa6   :  { %556 = vmatprep.subr.bf16.mxu0 %v4119_v37  ;;  %v4167_v37 = vld [vmem:[#allocation10 + $0xc0] ss:$16 sps:$4 sm:$0xff]  }
  0xa9   :  { %557 = vmatpush1.bf16.msra.mxu0 %v4117_v38  ;;  %v4170_v38 = vld [vmem:[#allocation10 + $0xc8] ss:$16 sps:$4 sm:$0xff]  }
  0xaa   :  { %558 = vmatprep.subr.bf16.mxu0 %v4125_v41  ;;  %v4173_v41 = vld [vmem:[#allocation10 + $0xe0] ss:$16 sps:$4 sm:$0xff]  }
  0xad   :  { %559 = vmatpush1.bf16.msra.mxu0 %v4123_v42  ;;  %v4176_v42 = vld [vmem:[#allocation10 + $0xe8] ss:$16 sps:$4 sm:$0xff]  }
  0xae   :  { %3631 = vmatprep.subr.msk.bf16.mxu0 %vm490_vm1, %v3628_v47  ;;  %v4187_v47 = vld [vmem:[#allocation10 + $0x124] ss:$16 sps:$4 sm:$0xff]  }
  0xb1   :  { %561 = vmatpush1.bf16.msra.mxu0 %v498_v53  ;;  %v4191_v53 = vld [vmem:[#allocation10 + $0x140] ss:$16 sps:$4 sm:$0xff]  }
  0xb2   :  { %1477 = vmatprep.subr.bf16.mxu0 %v4136_v55  ;;  %v4199_v55 = vld [vmem:[#allocation10 + $0x164] ss:$16 sps:$4 sm:$0xff]  }
 0x163   :  { %v241_v63 = vpop.f32.mrb[0].mxu0 }
 0x164   :  { %v242_v0 = vadd.f32 %v241_v63, %v156_v61  ;;  %v243_v1 = vpop.f32.mrb[1].mxu0  ;;  %v4200_v61 = vld [vmem:[#allocation10 + $0x168] ss:$16 sps:$4 sm:$0xff]   ;;  %v4208_v63 = vld [vmem:[#allocation10 + $0x18c] ss:$16 sps:$4 sm:$0xff]  }
 0x165   :  { %v244_v2 = vadd.f32 %v243_v1, %v160_v62  ;;  %v245_v3 = vpop.f32.mrb[2].mxu0  ;;  %v4205_v62 = vld [vmem:[#allocation10 + $0x184] ss:$16 sps:$4 sm:$0xff]   ;;  %v4206_v1 = vld [vmem:[#allocation10 + $0x188] ss:$16 sps:$4 sm:$0xff]  }
 0x166   :  { %vm248_vm3 = vcmp.ne.f32.partialorder %v242_v0, %v242_v0  ;;  %v246_v4 = vpop.f32.mrb[3].mxu0  ;;  %v4214_v3 = vld [vmem:[#allocation10 + $0x1ac] ss:$16 sps:$4 sm:$0xff]  }
 0x167   :  { %v250_v5 = vsel %vm248_vm3, 0.0, %v242_v0  ;;  %vm249_vm4 = vcmp.ne.f32.partialorder %v244_v2, %v244_v2  ;;  %v4203_v0 = vld [vmem:[#allocation10 + $0x180] ss:$16 sps:$4 sm:$0xff]  }
 0x168   :  { %v252_v6 = vmax.f32 %v250_v5, 0.0  ;;  %v251_v7 = vsel %vm249_vm4, 0.0, %v244_v2  ;;  %v4211_v2 = vld [vmem:[#allocation10 + $0x1a4] ss:$16 sps:$4 sm:$0xff]   ;;  %v4209_v4 = vld [vmem:[#allocation10 + $0x1a0] ss:$16 sps:$4 sm:$0xff]  }
 0x169   :  { %v253_v8 = vmax.f32 %v251_v7, 0.0  ;;  %v4212_v5 = vld [vmem:[#allocation10 + $0x1a8] ss:$16 sps:$4 sm:$0xff]   ;;  %v4220_v7 = vld [vmem:[#allocation10 + $0x1cc] ss:$16 sps:$4 sm:$0xff]  }
 0x16a   :  { %v254_v9 = vmin.f32 %v252_v6, 3.4028235e+38  ;;  %v4217_v6 = vld [vmem:[#allocation10 + $0x1c4] ss:$16 sps:$4 sm:$0xff]  }
 0x16b   :  { %v255_v10 = vmin.f32 %v253_v8, 3.4028235e+38  ;;  %v4215_v8 = vld [vmem:[#allocation10 + $0x1c0] ss:$16 sps:$4 sm:$0xff]  }
 0x16d   :  { %v256_v11 = vmax.f32 %v254_v9, %v255_v10  ;;  %v4218_v9 = vld [vmem:[#allocation10 + $0x1c8] ss:$16 sps:$4 sm:$0xff]   ;;  %v4223_v10 = vld [vmem:[#allocation10 + $0x1e4] ss:$16 sps:$4 sm:$0xff]  }
 0x16f   :  { %v258_v14 = vpack.c.bf16 %v256_v11, %v256_v11  ;;  %v4226_v11 = vld [vmem:[#allocation10 + $0x1ec] ss:$16 sps:$4 sm:$0xff]  }
 0x171   :  { %536 = vmatmul.mubr.bf16.vlgmr.msra.gmra.mrb[0].mxu1 %v258_v14  ;;  %577 = vmatmul.mubr.bf16.vlgmr.msra.gmra.mrb[4].mxu0 %v258_v14  ;;  %v4229_v14 = vld [vmem:[#allocation10 + $0x204] ss:$16 sps:$4 sm:$0xff]  }
 0x172   :  { %1396 = vmatpush1.bf16.msra.mxu1 %v4131_v12  ;;  %1478 = vmatpush1.bf16.msra.mxu0 %v4134_v13  ;;  %v4221_v12 = vld [vmem:[#allocation10 + $0x1e0] ss:$16 sps:$4 sm:$0xff]   ;;  %v4224_v13 = vld [vmem:[#allocation10 + $0x1e8] ss:$16 sps:$4 sm:$0xff]  }
 0x173   :  { %1397 = vmatprep.subr.bf16.mxu1 %v4139_v15  ;;  %1479 = vmatprep.subr.bf16.mxu0 %v4142_v16  ;;  %v4232_v15 = vld [vmem:[#allocation10 + $0x20c] ss:$16 sps:$4 sm:$0xff]  }
 0x174   :  { %v5086_v16 = vld [vmem:[%s5163_s5] sm:$0xf] }
 0x176   :  { %1398 = vmatpush1.bf16.msra.mxu1 %v4137_v17  ;;  %1480 = vmatpush1.bf16.msra.mxu0 %v4140_v18  ;;  %v5089_v17 = vsub.s32 3, %v5073_v57  ;;  %v299_v18 = vrot.slane %v5086_v16, %v5076_v58 }
 0x177   :  { %1399 = vmatprep.subr.bf16.mxu1 %v4145_v19  ;;  %1481 = vmatprep.subr.bf16.mxu0 %v4148_v20  ;;  %v303_v19 = vrot.slane %v5086_v16, %v5079_v60 }
 0x178   :  { %v311_v20 = vrot.slane %v5086_v16, %v5089_v17 }
 0x17a   :  { %1400 = vmatpush1.bf16.msra.mxu1 %v4143_v21  ;;  %1482 = vmatpush1.bf16.msra.mxu0 %v4146_v22 }
 0x17b   :  { %1401 = vmatprep.subr.bf16.mxu1 %v4151_v23  ;;  %1483 = vmatprep.subr.bf16.mxu0 %v4154_v24 }
 0x17e   :  { %1402 = vmatpush1.bf16.msra.mxu1 %v4149_v25  ;;  %1484 = vmatpush1.bf16.msra.mxu0 %v4152_v26 }
 0x17f   :  { %1403 = vmatprep.subr.bf16.mxu1 %v4157_v27  ;;  %1485 = vmatprep.subr.bf16.mxu0 %v4160_v28 }
 0x182   :  { %1404 = vmatpush1.bf16.msra.mxu1 %v4155_v29  ;;  %1486 = vmatpush1.bf16.msra.mxu0 %v4158_v30 }
 0x183   :  { %1405 = vmatprep.subr.bf16.mxu1 %v4163_v31  ;;  %1487 = vmatprep.subr.bf16.mxu0 %v4166_v32 }
 0x186   :  { %1406 = vmatpush1.bf16.msra.mxu1 %v4161_v33  ;;  %1488 = vmatpush1.bf16.msra.mxu0 %v4164_v34 }
 0x187   :  { %1407 = vmatprep.subr.bf16.mxu1 %v4169_v35  ;;  %1489 = vmatprep.subr.bf16.mxu0 %v4172_v36 }
 0x18a   :  { %1408 = vmatpush1.bf16.msra.mxu1 %v4167_v37  ;;  %1490 = vmatpush1.bf16.msra.mxu0 %v4170_v38 }
 0x18b   :  { %1409 = vmatprep.subr.bf16.mxu1 %v4175_v39  ;;  %1491 = vmatprep.subr.bf16.mxu0 %v4178_v40 }
 0x18e   :  { %1410 = vmatpush1.bf16.msra.mxu1 %v4173_v41  ;;  %1492 = vmatpush1.bf16.msra.mxu0 %v4176_v42  ;;  %v4227_v42 = vld [vmem:[#allocation10 + $0x200] ss:$16 sps:$4 sm:$0xff]  }
 0x18f   :  { %1411 = vmatprep.subr.bf16.mxu1 %v4181_v43  ;;  %1493 = vmatprep.subr.bf16.mxu0 %v4184_v44  ;;  %v4230_v43 = vld [vmem:[#allocation10 + $0x208] ss:$16 sps:$4 sm:$0xff]  }
 0x192   :  { %1412 = vmatpush1.bf16.msra.mxu1 %v4179_v45  ;;  %1494 = vmatpush1.bf16.msra.mxu0 %v4182_v46  ;;  %v4235_v45 = vld [vmem:[#allocation10 + $0x224] ss:$16 sps:$4 sm:$0xff]   ;;  %v4238_v46 = vld [vmem:[#allocation10 + $0x22c] ss:$16 sps:$4 sm:$0xff]  }
 0x193   :  { %1413 = vmatprep.subr.bf16.mxu1 %v4187_v47  ;;  %1495 = vmatprep.subr.bf16.mxu0 %v4190_v48  ;;  %v4233_v48 = vld [vmem:[#allocation10 + $0x220] ss:$16 sps:$4 sm:$0xff]  }
 0x196   :  { %1414 = vmatpush1.bf16.msra.mxu1 %v4185_v49  ;;  %1496 = vmatpush1.bf16.msra.mxu0 %v4188_v50  ;;  %v4236_v49 = vld [vmem:[#allocation10 + $0x228] ss:$16 sps:$4 sm:$0xff]   ;;  %v4241_v50 = vld [vmem:[#allocation10 + $0x244] ss:$16 sps:$4 sm:$0xff]  }
 0x197   :  { %1415 = vmatprep.subr.bf16.mxu1 %v4193_v51  ;;  %1497 = vmatprep.subr.bf16.mxu0 %v4196_v52  ;;  %v4244_v51 = vld [vmem:[#allocation10 + $0x24c] ss:$16 sps:$4 sm:$0xff]   ;;  %v4239_v52 = vld [vmem:[#allocation10 + $0x240] ss:$16 sps:$4 sm:$0xff]  }
 0x19a   :  { %1416 = vmatpush1.bf16.msra.mxu1 %v4191_v53  ;;  %1498 = vmatpush1.bf16.msra.mxu0 %v4194_v54  ;;  %v4242_v53 = vld [vmem:[#allocation10 + $0x248] ss:$16 sps:$4 sm:$0xff]   ;;  %v4247_v54 = vld [vmem:[#allocation10 + $0x264] ss:$16 sps:$4 sm:$0xff]  }
 0x19b   :  { %1417 = vmatprep.subr.bf16.mxu1 %v4199_v55  ;;  %1499 = vmatprep.subr.bf16.mxu0 %v4202_v56  ;;  %v4250_v55 = vld [vmem:[#allocation10 + $0x26c] ss:$16 sps:$4 sm:$0xff]   ;;  %v4245_v56 = vld [vmem:[#allocation10 + $0x260] ss:$16 sps:$4 sm:$0xff]  }
 0x19e   :  { %1418 = vmatpush1.bf16.msra.mxu1 %v4197_v59  ;;  %1500 = vmatpush1.bf16.msra.mxu0 %v4200_v61  ;;  %v4248_v59 = vld [vmem:[#allocation10 + $0x268] ss:$16 sps:$4 sm:$0xff]   ;;  %v4253_v61 = vld [vmem:[#allocation10 + $0x284] ss:$16 sps:$4 sm:$0xff]  }
 0x19f   :  { %1419 = vmatprep.subr.bf16.mxu1 %v4205_v62  ;;  %1501 = vmatprep.subr.bf16.mxu0 %v4208_v63  ;;  %v4256_v62 = vld [vmem:[#allocation10 + $0x28c] ss:$16 sps:$4 sm:$0xff]   ;;  %v4251_v63 = vld [vmem:[#allocation10 + $0x280] ss:$16 sps:$4 sm:$0xff]  }
 0x1a2   :  { %1420 = vmatpush1.bf16.msra.mxu1 %v4203_v0  ;;  %1502 = vmatpush1.bf16.msra.mxu0 %v4206_v1  ;;  %v4254_v0 = vld [vmem:[#allocation10 + $0x288] ss:$16 sps:$4 sm:$0xff]   ;;  %v4259_v1 = vld [vmem:[#allocation10 + $0x2a4] ss:$16 sps:$4 sm:$0xff]  }
 0x1a3   :  { %1421 = vmatprep.subr.bf16.mxu1 %v4211_v2  ;;  %1503 = vmatprep.subr.bf16.mxu0 %v4214_v3  ;;  %v4262_v2 = vld [vmem:[#allocation10 + $0x2ac] ss:$16 sps:$4 sm:$0xff]   ;;  %v4257_v3 = vld [vmem:[#allocation10 + $0x2a0] ss:$16 sps:$4 sm:$0xff]  }
 0x1a6   :  { %1422 = vmatpush1.bf16.msra.mxu1 %v4209_v4  ;;  %1504 = vmatpush1.bf16.msra.mxu0 %v4212_v5  ;;  %v4260_v4 = vld [vmem:[#allocation10 + $0x2a8] ss:$16 sps:$4 sm:$0xff]   ;;  %v4265_v5 = vld [vmem:[#allocation10 + $0x2c4] ss:$16 sps:$4 sm:$0xff]  }
 0x1a7   :  { %1423 = vmatprep.subr.bf16.mxu1 %v4217_v6  ;;  %1505 = vmatprep.subr.bf16.mxu0 %v4220_v7  ;;  %v4268_v6 = vld [vmem:[#allocation10 + $0x2cc] ss:$16 sps:$4 sm:$0xff]   ;;  %v4263_v7 = vld [vmem:[#allocation10 + $0x2c0] ss:$16 sps:$4 sm:$0xff]  }
 0x1aa   :  { %1424 = vmatpush1.bf16.msra.mxu1 %v4215_v8  ;;  %1506 = vmatpush1.bf16.msra.mxu0 %v4218_v9  ;;  %v4266_v8 = vld [vmem:[#allocation10 + $0x2c8] ss:$16 sps:$4 sm:$0xff]   ;;  %v4271_v9 = vld [vmem:[#allocation10 + $0x2e4] ss:$16 sps:$4 sm:$0xff]  }
 0x1ab   :  { %1425 = vmatprep.subr.bf16.mxu1 %v4223_v10  ;;  %1507 = vmatprep.subr.bf16.mxu0 %v4226_v11  ;;  %v4274_v10 = vld [vmem:[#allocation10 + $0x2ec] ss:$16 sps:$4 sm:$0xff]   ;;  %v4269_v11 = vld [vmem:[#allocation10 + $0x2e0] ss:$16 sps:$4 sm:$0xff]  }
 0x1ae   :  { %1426 = vmatpush1.bf16.msra.mxu1 %v4221_v12  ;;  %1508 = vmatpush1.bf16.msra.mxu0 %v4224_v13  ;;  %v4272_v12 = vld [vmem:[#allocation10 + $0x2e8] ss:$16 sps:$4 sm:$0xff]   ;;  %v4277_v13 = vld [vmem:[#allocation10 + $0x304] ss:$16 sps:$4 sm:$0xff]  }
 0x1af   :  { %1436 = vmatprep.subr.bf16.mxu1 %v4229_v14  ;;  %1518 = vmatprep.subr.bf16.mxu0 %v4232_v15  ;;  %v4280_v14 = vld [vmem:[#allocation10 + $0x30c] ss:$16 sps:$4 sm:$0xff]   ;;  %v4275_v15 = vld [vmem:[#allocation10 + $0x300] ss:$16 sps:$4 sm:$0xff]  }
 0x244   :  { %v537_v21 = vpop.f32.mrb[0].mxu1  ;;  %v5097_v22 = vpop.f32.mrb[4].mxu0 }
 0x245   :  { %v538_v23 = vadd.f32 %v537_v21, %v299_v18  ;;  %v539_v24 = vpop.f32.mrb[1].mxu1  ;;  %v580_v25 = vpop.f32.mrb[5].mxu0  ;;  %v4278_v18 = vld [vmem:[#allocation10 + $0x308] ss:$16 sps:$4 sm:$0xff]   ;;  %v4281_v21 = vld [vmem:[#allocation10 + $0x320] ss:$16 sps:$4 sm:$0xff]  }
 0x246   :  { %v540_v26 = vadd.f32 %v539_v24, %v303_v19  ;;  %v581_v27 = vadd.f32 %v580_v25, %v311_v20  ;;  %v541_v28 = vpop.f32.mrb[2].mxu1  ;;  %v582_v29 = vpop.f32.mrb[6].mxu0  ;;  %v4283_v19 = vld [vmem:[#allocation10 + $0x324] ss:$16 sps:$4 sm:$0xff]   ;;  %v4286_v20 = vld [vmem:[#allocation10 + $0x32c] ss:$16 sps:$4 sm:$0xff]  }
 0x247   :  { %vm585_vm5 = vcmp.ne.f32.partialorder %v538_v23, %v538_v23  ;;  %v542_v30 = vpop.f32.mrb[3].mxu1  ;;  %v583_v31 = vpop.f32.mrb[7].mxu0  ;;  %v4289_v24 = vld [vmem:[#allocation10 + $0x344] ss:$16 sps:$4 sm:$0xff]   ;;  %v4292_v25 = vld [vmem:[#allocation10 + $0x34c] ss:$16 sps:$4 sm:$0xff]  }
 0x248   :  { %v589_v32 = vsel %vm585_vm5, 0.0, %v538_v23  ;;  %vm586_vm6 = vcmp.ne.f32.partialorder %v540_v26, %v540_v26  ;;  %vm588_vm7 = vcmp.ne.f32.partialorder %v581_v27, %v581_v27  ;;  %v4284_v23 = vld [vmem:[#allocation10 + $0x328] ss:$16 sps:$4 sm:$0xff]   ;;  %v4295_v29 = vld [vmem:[#allocation10 + $0x364] ss:$16 sps:$4 sm:$0xff]  }
 0x249   :  { %v593_v33 = vmax.f32 %v589_v32, 0.0  ;;  %v590_v34 = vsel %vm586_vm6, 0.0, %v540_v26  ;;  %v592_v35 = vsel %vm588_vm7, 0.0, %v581_v27  ;;  %v5100_v26 = vsub.s32 2, %v5073_v57  ;;  %v4287_v27 = vld [vmem:[#allocation10 + $0x340] ss:$16 sps:$4 sm:$0xff]  }
 0x24a   :  { %v594_v36 = vmax.f32 %v590_v34, 0.0  ;;  %v596_v37 = vmax.f32 %v592_v35, 0.0  ;;  %v4290_v28 = vld [vmem:[#allocation10 + $0x348] ss:$16 sps:$4 sm:$0xff]   ;;  %v4298_v30 = vld [vmem:[#allocation10 + $0x36c] ss:$16 sps:$4 sm:$0xff]  }
 0x24b   :  { %v597_v38 = vmin.f32 %v593_v33, 3.4028235e+38  ;;  %v307_v31 = vrot.slane %v5086_v16, %v5100_v26  ;;  %v4293_v32 = vld [vmem:[#allocation10 + $0x360] ss:$16 sps:$4 sm:$0xff]   ;;  %v4296_v33 = vld [vmem:[#allocation10 + $0x368] ss:$16 sps:$4 sm:$0xff]  }
 0x24c   :  { %v598_v39 = vmin.f32 %v594_v36, 3.4028235e+38  ;;  %v600_v40 = vmin.f32 %v596_v37, 3.4028235e+38  ;;  %v4301_v34 = vld [vmem:[#allocation10 + $0x384] ss:$16 sps:$4 sm:$0xff]  }
 0x24d   :  { %v601_v44 = vpack.c.bf16 %v597_v38, %v597_v38  ;;  %v4304_v57 = vld [vmem:[#allocation10 + $0x38c] ss:$16 sps:$4 sm:$0xff]   ;;  %v579_v35 = vadd.f32 %v5097_v22, %v307_v31  ;;  %v4299_v36 = vld [vmem:[#allocation10 + $0x380] ss:$16 sps:$4 sm:$0xff]   ;;  %v4302_v37 = vld [vmem:[#allocation10 + $0x388] ss:$16 sps:$4 sm:$0xff]  }
 0x24e   :  { %v602_v41 = vpack.c.bf16 %v598_v39, %v598_v39  ;;  %v604_v47 = vpack.c.bf16 %v600_v40, %v600_v40  ;;  %v4307_v38 = vld [vmem:[#allocation10 + $0x3a4] ss:$16 sps:$4 sm:$0xff]   ;;  %v4310_v39 = vld [vmem:[#allocation10 + $0x3ac] ss:$16 sps:$4 sm:$0xff]   ;;  %v4305_v16 = vld [vmem:[#allocation10 + $0x3a0] ss:$16 sps:$4 sm:$0xff]  }
 0x24f   :  { %vm587_vm8 = vcmp.ne.f32.partialorder %v579_v35, %v579_v35  ;;  %v4308_v40 = vld [vmem:[#allocation10 + $0x3a8] ss:$16 sps:$4 sm:$0xff]   ;;  %v4311_v22 = vld [vmem:[#allocation10 + $0x3c0] ss:$16 sps:$4 sm:$0xff]   ;;  %v4379_v31 = vld [vmem:[#allocation11 + $0x124] ss:$16 sps:$4 sm:$0xff]  }
 0x250   :  { %1427 = vmatprep.mubr.bf16.mxu1 %v602_v41  ;;  %1509 = vmatprep.mubr.bf16.mxu0 %v602_v41  ;;  %v4313_v41 = vld [vmem:[#allocation10 + $0x3c4] ss:$16 sps:$4 sm:$0xff]   ;;  %vm3574_vm7 = vcmask 1024  }
 0x251   :  { %1428 = vmatmul.mubr.bf16.vlgmr.msra.gmra.mrb[4].mxu1 %v601_v44  ;;  %1510 = vmatmul.mubr.bf16.vlgmr.msra.gmra.mrb[8].mxu0 %v601_v44  ;;  %v4314_v44 = vld [vmem:[#allocation10 + $0x3c8] ss:$16 sps:$4 sm:$0xff]  }
 0x252   :  { %1437 = vmatpush1.bf16.msra.mxu1 %v4227_v42  ;;  %1519 = vmatpush1.bf16.msra.mxu0 %v4230_v43  ;;  %v4316_v42 = vld [vmem:[#allocation10 + $0x3cc] ss:$16 sps:$4 sm:$0xff]   ;;  %v591_v43 = vsel %vm587_vm8, 0.0, %v579_v35 }
 0x253   :  { %1468 = vmatprep.mubr.bf16.mxu1 %v604_v47  ;;  %1550 = vmatprep.mubr.bf16.mxu0 %v604_v47  ;;  %v4322_v47 = vld [vmem:[#allocation10 + $0x3ec] ss:$16 sps:$4 sm:$0xff]  }
 0x254   :  { %1438 = vmatprep.subr.bf16.mxu1 %v4235_v45  ;;  %1520 = vmatprep.subr.bf16.mxu0 %v4238_v46  ;;  %v595_v45 = vmax.f32 %v591_v43, 0.0  ;;  %v4319_v46 = vld [vmem:[#allocation10 + $0x3e4] ss:$16 sps:$4 sm:$0xff]   ;;  %v4388_v35 = vld [vmem:[#allocation11 + $0x14c] ss:$16 sps:$4 sm:$0xff]  }
 0x255   :  { %v4395_v43 = vld [vmem:[#allocation11 + $0x180] ss:$16 sps:$4 sm:$0xff]  }
 0x256   :  { %1439 = vmatpush1.bf16.msra.mxu1 %v4233_v48  ;;  %1521 = vmatpush1.bf16.msra.mxu0 %v4236_v49  ;;  %v4317_v48 = vld [vmem:[#allocation10 + $0x3e0] ss:$16 sps:$4 sm:$0xff]   ;;  %v4320_v49 = vld [vmem:[#allocation10 + $0x3e8] ss:$16 sps:$4 sm:$0xff]  }
 0x257   :  { %1440 = vmatprep.subr.bf16.mxu1 %v4241_v50  ;;  %1522 = vmatprep.subr.bf16.mxu0 %v4244_v51  ;;  %v599_v50 = vmin.f32 %v595_v45, 3.4028235e+38  ;;  %v4325_v51 = vld [vmem:[#allocation11 + $0x4] ss:$16 sps:$4 sm:$0xff]   ;;  %v4406_v45 = vld [vmem:[#allocation11 + $0x1ac] ss:$16 sps:$4 sm:$0xff]  }
 0x25a   :  { %1441 = vmatpush1.bf16.msra.mxu1 %v4239_v52  ;;  %1523 = vmatpush1.bf16.msra.mxu0 %v4242_v53  ;;  %v4328_v52 = vld [vmem:[#allocation11 + $0xc] ss:$16 sps:$4 sm:$0xff]   ;;  %v4323_v53 = vld [vmem:[#allocation11] ss:$16 sps:$4 sm:$0xff]  }
 0x25b   :  { %1442 = vmatprep.subr.bf16.mxu1 %v4247_v54  ;;  %1524 = vmatprep.subr.bf16.mxu0 %v4250_v55  ;;  %v4326_v54 = vld [vmem:[#allocation11 + $0x8] ss:$16 sps:$4 sm:$0xff]   ;;  %v603_v55 = vpack.c.bf16 %v599_v50, %v599_v50  ;;  %v4407_v50 = vld [vmem:[#allocation11 + $0x1c0] ss:$16 sps:$4 sm:$0xff]  }
 0x25e   :  { %1443 = vmatpush1.bf16.msra.mxu1 %v4245_v56  ;;  %1525 = vmatpush1.bf16.msra.mxu0 %v4248_v59  ;;  %v4331_v56 = vld [vmem:[#allocation11 + $0x24] ss:$16 sps:$4 sm:$0xff]   ;;  %v4334_v59 = vld [vmem:[#allocation11 + $0x2c] ss:$16 sps:$4 sm:$0xff]  }
 0x25f   :  { %1444 = vmatprep.subr.bf16.mxu1 %v4253_v61  ;;  %1526 = vmatprep.subr.bf16.mxu0 %v4256_v62  ;;  %v4329_v61 = vld [vmem:[#allocation11 + $0x20] ss:$16 sps:$4 sm:$0xff]   ;;  %v4332_v62 = vld [vmem:[#allocation11 + $0x28] ss:$16 sps:$4 sm:$0xff]  }
 0x262   :  { %1445 = vmatpush1.bf16.msra.mxu1 %v4251_v63  ;;  %1527 = vmatpush1.bf16.msra.mxu0 %v4254_v0  ;;  %v4337_v63 = vld [vmem:[#allocation11 + $0x44] ss:$16 sps:$4 sm:$0xff]   ;;  %v4340_v0 = vld [vmem:[#allocation11 + $0x4c] ss:$16 sps:$4 sm:$0xff]  }
 0x263   :  { %1446 = vmatprep.subr.bf16.mxu1 %v4259_v1  ;;  %1528 = vmatprep.subr.bf16.mxu0 %v4262_v2  ;;  %v4335_v1 = vld [vmem:[#allocation11 + $0x40] ss:$16 sps:$4 sm:$0xff]   ;;  %v4338_v2 = vld [vmem:[#allocation11 + $0x48] ss:$16 sps:$4 sm:$0xff]  }
 0x266   :  { %1447 = vmatpush1.bf16.msra.mxu1 %v4257_v3  ;;  %1529 = vmatpush1.bf16.msra.mxu0 %v4260_v4  ;;  %v4343_v3 = vld [vmem:[#allocation11 + $0x64] ss:$16 sps:$4 sm:$0xff]   ;;  %v4346_v4 = vld [vmem:[#allocation11 + $0x6c] ss:$16 sps:$4 sm:$0xff]  }
 0x267   :  { %1448 = vmatprep.subr.bf16.mxu1 %v4265_v5  ;;  %1530 = vmatprep.subr.bf16.mxu0 %v4268_v6  ;;  %v4341_v5 = vld [vmem:[#allocation11 + $0x60] ss:$16 sps:$4 sm:$0xff]   ;;  %v4344_v6 = vld [vmem:[#allocation11 + $0x68] ss:$16 sps:$4 sm:$0xff]  }
 0x26a   :  { %1449 = vmatpush1.bf16.msra.mxu1 %v4263_v7  ;;  %1531 = vmatpush1.bf16.msra.mxu0 %v4266_v8  ;;  %v4349_v7 = vld [vmem:[#allocation11 + $0x84] ss:$16 sps:$4 sm:$0xff]   ;;  %v4352_v8 = vld [vmem:[#allocation11 + $0x8c] ss:$16 sps:$4 sm:$0xff]  }
 0x26b   :  { %1450 = vmatprep.subr.bf16.mxu1 %v4271_v9  ;;  %1532 = vmatprep.subr.bf16.mxu0 %v4274_v10  ;;  %v4347_v9 = vld [vmem:[#allocation11 + $0x80] ss:$16 sps:$4 sm:$0xff]   ;;  %v4350_v10 = vld [vmem:[#allocation11 + $0x88] ss:$16 sps:$4 sm:$0xff]  }
 0x26e   :  { %1451 = vmatpush1.bf16.msra.mxu1 %v4269_v11  ;;  %1533 = vmatpush1.bf16.msra.mxu0 %v4272_v12  ;;  %v4355_v11 = vld [vmem:[#allocation11 + $0xa4] ss:$16 sps:$4 sm:$0xff]   ;;  %v4358_v12 = vld [vmem:[#allocation11 + $0xac] ss:$16 sps:$4 sm:$0xff]  }
 0x26f   :  { %1452 = vmatprep.subr.bf16.mxu1 %v4277_v13  ;;  %1534 = vmatprep.subr.bf16.mxu0 %v4280_v14  ;;  %v4353_v13 = vld [vmem:[#allocation11 + $0xa0] ss:$16 sps:$4 sm:$0xff]   ;;  %v4356_v14 = vld [vmem:[#allocation11 + $0xa8] ss:$16 sps:$4 sm:$0xff]  }
 0x272   :  { %1453 = vmatpush1.bf16.msra.mxu1 %v4275_v15  ;;  %1535 = vmatpush1.bf16.msra.mxu0 %v4278_v18  ;;  %v4361_v15 = vld [vmem:[#allocation11 + $0xc4] ss:$16 sps:$4 sm:$0xff]   ;;  %v4364_v18 = vld [vmem:[#allocation11 + $0xcc] ss:$16 sps:$4 sm:$0xff]  }
 0x273   :  { %1454 = vmatprep.subr.bf16.mxu1 %v4283_v19  ;;  %1536 = vmatprep.subr.bf16.mxu0 %v4286_v20  ;;  %v4359_v19 = vld [vmem:[#allocation11 + $0xc0] ss:$16 sps:$4 sm:$0xff]   ;;  %v4362_v20 = vld [vmem:[#allocation11 + $0xc8] ss:$16 sps:$4 sm:$0xff]  }
 0x276   :  { %1455 = vmatpush1.bf16.msra.mxu1 %v4281_v21  ;;  %1537 = vmatpush1.bf16.msra.mxu0 %v4284_v23  ;;  %v4367_v21 = vld [vmem:[#allocation11 + $0xe4] ss:$16 sps:$4 sm:$0xff]   ;;  %v4370_v23 = vld [vmem:[#allocation11 + $0xec] ss:$16 sps:$4 sm:$0xff]  }
 0x277   :  { %1456 = vmatprep.subr.bf16.mxu1 %v4289_v24  ;;  %1538 = vmatprep.subr.bf16.mxu0 %v4292_v25  ;;  %v4365_v24 = vld [vmem:[#allocation11 + $0xe0] ss:$16 sps:$4 sm:$0xff]   ;;  %v4368_v25 = vld [vmem:[#allocation11 + $0xe8] ss:$16 sps:$4 sm:$0xff]  }
 0x27a   :  { %1457 = vmatpush1.bf16.msra.mxu1 %v4287_v27  ;;  %1539 = vmatpush1.bf16.msra.mxu0 %v4290_v28  ;;  %v4373_v27 = vld [vmem:[#allocation11 + $0x104] ss:$16 sps:$4 sm:$0xff]   ;;  %v4376_v28 = vld [vmem:[#allocation11 + $0x10c] ss:$16 sps:$4 sm:$0xff]  }
 0x27b   :  { %1458 = vmatprep.subr.bf16.mxu1 %v4295_v29  ;;  %1540 = vmatprep.subr.bf16.mxu0 %v4298_v30  ;;  %v4371_v29 = vld [vmem:[#allocation11 + $0x100] ss:$16 sps:$4 sm:$0xff]   ;;  %v4374_v30 = vld [vmem:[#allocation11 + $0x108] ss:$16 sps:$4 sm:$0xff]  }
 0x27e   :  { %1459 = vmatpush1.bf16.msra.mxu1 %v4293_v32  ;;  %1541 = vmatpush1.bf16.msra.mxu0 %v4296_v33  ;;  %v4382_v32 = vld [vmem:[#allocation11 + $0x12c] ss:$16 sps:$4 sm:$0xff]   ;;  %v4377_v33 = vld [vmem:[#allocation11 + $0x120] ss:$16 sps:$4 sm:$0xff]  }
 0x27f   :  { %1460 = vmatprep.subr.bf16.mxu1 %v4301_v34  ;;  %1542 = vmatprep.subr.bf16.mxu0 %v4304_v57  ;;  %v4380_v34 = vld [vmem:[#allocation11 + $0x128] ss:$16 sps:$4 sm:$0xff]   ;;  %v4385_v57 = vld [vmem:[#allocation11 + $0x144] ss:$16 sps:$4 sm:$0xff]  }
 0x282   :  { %1461 = vmatpush1.bf16.msra.mxu1 %v4299_v36  ;;  %1543 = vmatpush1.bf16.msra.mxu0 %v4302_v37  ;;  %v4383_v36 = vld [vmem:[#allocation11 + $0x140] ss:$16 sps:$4 sm:$0xff]   ;;  %v4386_v37 = vld [vmem:[#allocation11 + $0x148] ss:$16 sps:$4 sm:$0xff]  }
 0x283   :  { %1462 = vmatprep.subr.bf16.mxu1 %v4307_v38  ;;  %1544 = vmatprep.subr.bf16.mxu0 %v4310_v39  ;;  %v4391_v38 = vld [vmem:[#allocation11 + $0x164] ss:$16 sps:$4 sm:$0xff]   ;;  %v4394_v39 = vld [vmem:[#allocation11 + $0x16c] ss:$16 sps:$4 sm:$0xff]  }
 0x286   :  { %1463 = vmatpush1.bf16.msra.mxu1 %v4305_v16  ;;  %1545 = vmatpush1.bf16.msra.mxu0 %v4308_v40  ;;  %v4389_v16 = vld [vmem:[#allocation11 + $0x160] ss:$16 sps:$4 sm:$0xff]   ;;  %v4392_v40 = vld [vmem:[#allocation11 + $0x168] ss:$16 sps:$4 sm:$0xff]  }
 0x287   :  { %1464 = vmatprep.subr.bf16.mxu1 %v4313_v41  ;;  %1546 = vmatprep.subr.bf16.mxu0 %v4316_v42  ;;  %v4397_v41 = vld [vmem:[#allocation11 + $0x184] ss:$16 sps:$4 sm:$0xff]   ;;  %v4400_v42 = vld [vmem:[#allocation11 + $0x18c] ss:$16 sps:$4 sm:$0xff]  }
 0x28a   :  { %1465 = vmatpush1.bf16.msra.mxu1 %v4311_v22  ;;  %1547 = vmatpush1.bf16.msra.mxu0 %v4314_v44  ;;  %v4398_v22 = vld [vmem:[#allocation11 + $0x188] ss:$16 sps:$4 sm:$0xff]   ;;  %v4403_v44 = vld [vmem:[#allocation11 + $0x1a4] ss:$16 sps:$4 sm:$0xff]  }
 0x28b   :  { %1466 = vmatprep.subr.bf16.mxu1 %v4319_v46  ;;  %1548 = vmatprep.subr.bf16.mxu0 %v4322_v47  ;;  %v4401_v46 = vld [vmem:[#allocation11 + $0x1a0] ss:$16 sps:$4 sm:$0xff]   ;;  %v4404_v47 = vld [vmem:[#allocation11 + $0x1a8] ss:$16 sps:$4 sm:$0xff]  }
 0x28e   :  { %1467 = vmatpush1.bf16.msra.mxu1 %v4317_v48  ;;  %1549 = vmatpush1.bf16.msra.mxu0 %v4320_v49  ;;  %v4409_v48 = vld [vmem:[#allocation11 + $0x1c4] ss:$16 sps:$4 sm:$0xff]   ;;  %v4412_v49 = vld [vmem:[#allocation11 + $0x1cc] ss:$16 sps:$4 sm:$0xff]  }
 0x28f   :  { %2369 = vmatprep.subr.bf16.mxu1 %v4325_v51  ;;  %2451 = vmatprep.subr.bf16.mxu0 %v4328_v52  ;;  %v4410_v51 = vld [vmem:[#allocation11 + $0x1c8] ss:$16 sps:$4 sm:$0xff]   ;;  %v4415_v52 = vld [vmem:[#allocation11 + $0x1e4] ss:$16 sps:$4 sm:$0xff]  }
 0x291   :  { %1469 = vmatmul.mubr.bf16.vlgmr.msra.gmra.mrb[4].mxu1 %v603_v55  ;;  %1551 = vmatmul.mubr.bf16.vlgmr.msra.gmra.mrb[8].mxu0 %v603_v55  ;;  %v4416_v55 = vld [vmem:[#allocation11 + $0x1e8] ss:$16 sps:$4 sm:$0xff]  }
 0x292   :  { %2370 = vmatpush1.bf16.msra.mxu1 %v4323_v53  ;;  %2452 = vmatpush1.bf16.msra.mxu0 %v4326_v54  ;;  %v4418_v53 = vld [vmem:[#allocation11 + $0x1ec] ss:$16 sps:$4 sm:$0xff]   ;;  %v4413_v54 = vld [vmem:[#allocation11 + $0x1e0] ss:$16 sps:$4 sm:$0xff]  }
 0x293   :  { %2371 = vmatprep.subr.bf16.mxu1 %v4331_v56  ;;  %2453 = vmatprep.subr.bf16.mxu0 %v4334_v59  ;;  %v4421_v56 = vld [vmem:[#allocation11 + $0x204] ss:$16 sps:$4 sm:$0xff]   ;;  %v4424_v59 = vld [vmem:[#allocation11 + $0x20c] ss:$16 sps:$4 sm:$0xff]  }
 0x296   :  { %2372 = vmatpush1.bf16.msra.mxu1 %v4329_v61  ;;  %2454 = vmatpush1.bf16.msra.mxu0 %v4332_v62  ;;  %v5108_v61 = vld [vmem:[%s5165_s7] sm:$0xf] }
 0x297   :  { %2373 = vmatprep.subr.bf16.mxu1 %v4337_v63  ;;  %2455 = vmatprep.subr.bf16.mxu0 %v4340_v0  ;;  %v738_v62 = vrot.slane %v5108_v61, %v5076_v58  ;;  %v742_v63 = vrot.slane %v5108_v61, %v5079_v60  ;;  %v750_v0 = vrot.slane %v5108_v61, %v5089_v17 }
 0x29a   :  { %2374 = vmatpush1.bf16.msra.mxu1 %v4335_v1  ;;  %2456 = vmatpush1.bf16.msra.mxu0 %v4338_v2 }
 0x29b   :  { %2375 = vmatprep.subr.bf16.mxu1 %v4343_v3  ;;  %2457 = vmatprep.subr.bf16.mxu0 %v4346_v4 }
 0x29e   :  { %2376 = vmatpush1.bf16.msra.mxu1 %v4341_v5  ;;  %2458 = vmatpush1.bf16.msra.mxu0 %v4344_v6 }
 0x29f   :  { %2377 = vmatprep.subr.bf16.mxu1 %v4349_v7  ;;  %2459 = vmatprep.subr.bf16.mxu0 %v4352_v8 }
 0x2a2   :  { %2378 = vmatpush1.bf16.msra.mxu1 %v4347_v9  ;;  %2460 = vmatpush1.bf16.msra.mxu0 %v4350_v10 }
 0x2a3   :  { %2379 = vmatprep.subr.bf16.mxu1 %v4355_v11  ;;  %2461 = vmatprep.subr.bf16.mxu0 %v4358_v12 }
 0x2a6   :  { %2380 = vmatpush1.bf16.msra.mxu1 %v4353_v13  ;;  %2462 = vmatpush1.bf16.msra.mxu0 %v4356_v14 }
 0x2a7   :  { %2381 = vmatprep.subr.bf16.mxu1 %v4361_v15  ;;  %2463 = vmatprep.subr.bf16.mxu0 %v4364_v18 }
 0x2aa   :  { %2382 = vmatpush1.bf16.msra.mxu1 %v4359_v19  ;;  %2464 = vmatpush1.bf16.msra.mxu0 %v4362_v20 }
 0x2ab   :  { %2383 = vmatprep.subr.bf16.mxu1 %v4367_v21  ;;  %2465 = vmatprep.subr.bf16.mxu0 %v4370_v23 }
 0x2ae   :  { %2384 = vmatpush1.bf16.msra.mxu1 %v4365_v24  ;;  %2466 = vmatpush1.bf16.msra.mxu0 %v4368_v25  ;;  %v4419_v25 = vld [vmem:[#allocation11 + $0x200] ss:$16 sps:$4 sm:$0xff]  }
 0x2af   :  { %2385 = vmatprep.subr.bf16.mxu1 %v4373_v27  ;;  %2467 = vmatprep.subr.bf16.mxu0 %v4376_v28  ;;  %v4422_v27 = vld [vmem:[#allocation11 + $0x208] ss:$16 sps:$4 sm:$0xff]  }
 0x2b2   :  { %2386 = vmatpush1.bf16.msra.mxu1 %v4371_v29  ;;  %2468 = vmatpush1.bf16.msra.mxu0 %v4374_v30  ;;  %v4427_v29 = vld [vmem:[#allocation11 + $0x224] ss:$16 sps:$4 sm:$0xff]   ;;  %v4430_v30 = vld [vmem:[#allocation11 + $0x22c] ss:$16 sps:$4 sm:$0xff]  }
 0x2b3   :  { %2387 = vmatprep.subr.bf16.mxu1 %v4379_v31  ;;  %2469 = vmatprep.subr.bf16.mxu0 %v4382_v32  ;;  %v4425_v32 = vld [vmem:[#allocation11 + $0x220] ss:$16 sps:$4 sm:$0xff]  }
 0x2b6   :  { %2388 = vmatpush1.bf16.msra.mxu1 %v4377_v33  ;;  %2470 = vmatpush1.bf16.msra.mxu0 %v4380_v34  ;;  %v4428_v33 = vld [vmem:[#allocation11 + $0x228] ss:$16 sps:$4 sm:$0xff]   ;;  %v4433_v34 = vld [vmem:[#allocation11 + $0x244] ss:$16 sps:$4 sm:$0xff]  }
 0x2b7   :  { %2389 = vmatprep.subr.bf16.mxu1 %v4385_v57  ;;  %2471 = vmatprep.subr.bf16.mxu0 %v4388_v35  ;;  %v4436_v57 = vld [vmem:[#allocation11 + $0x24c] ss:$16 sps:$4 sm:$0xff]   ;;  %v4431_v35 = vld [vmem:[#allocation11 + $0x240] ss:$16 sps:$4 sm:$0xff]  }
 0x2ba   :  { %2390 = vmatpush1.bf16.msra.mxu1 %v4383_v36  ;;  %2472 = vmatpush1.bf16.msra.mxu0 %v4386_v37  ;;  %v4434_v36 = vld [vmem:[#allocation11 + $0x248] ss:$16 sps:$4 sm:$0xff]   ;;  %v4439_v37 = vld [vmem:[#allocation11 + $0x264] ss:$16 sps:$4 sm:$0xff]  }
 0x2bb   :  { %2391 = vmatprep.subr.bf16.mxu1 %v4391_v38  ;;  %2473 = vmatprep.subr.bf16.mxu0 %v4394_v39  ;;  %v4442_v38 = vld [vmem:[#allocation11 + $0x26c] ss:$16 sps:$4 sm:$0xff]   ;;  %v4437_v39 = vld [vmem:[#allocation11 + $0x260] ss:$16 sps:$4 sm:$0xff]  }
 0x2be   :  { %2392 = vmatpush1.bf16.msra.mxu1 %v4389_v16  ;;  %2474 = vmatpush1.bf16.msra.mxu0 %v4392_v40  ;;  %v4440_v16 = vld [vmem:[#allocation11 + $0x268] ss:$16 sps:$4 sm:$0xff]   ;;  %v4445_v40 = vld [vmem:[#allocation11 + $0x284] ss:$16 sps:$4 sm:$0xff]  }
 0x2bf   :  { %2393 = vmatprep.subr.bf16.mxu1 %v4397_v41  ;;  %2475 = vmatprep.subr.bf16.mxu0 %v4400_v42  ;;  %v4448_v41 = vld [vmem:[#allocation11 + $0x28c] ss:$16 sps:$4 sm:$0xff]   ;;  %v4443_v42 = vld [vmem:[#allocation11 + $0x280] ss:$16 sps:$4 sm:$0xff]  }
 0x2c2   :  { %2394 = vmatpush1.bf16.msra.mxu1 %v4395_v43  ;;  %2476 = vmatpush1.bf16.msra.mxu0 %v4398_v22  ;;  %v4446_v43 = vld [vmem:[#allocation11 + $0x288] ss:$16 sps:$4 sm:$0xff]   ;;  %v4451_v22 = vld [vmem:[#allocation11 + $0x2a4] ss:$16 sps:$4 sm:$0xff]  }
 0x2c3   :  { %2395 = vmatprep.subr.bf16.mxu1 %v4403_v44  ;;  %2477 = vmatprep.subr.bf16.mxu0 %v4406_v45  ;;  %v4454_v44 = vld [vmem:[#allocation11 + $0x2ac] ss:$16 sps:$4 sm:$0xff]   ;;  %v4449_v45 = vld [vmem:[#allocation11 + $0x2a0] ss:$16 sps:$4 sm:$0xff]  }
 0x2c6   :  { %2396 = vmatpush1.bf16.msra.mxu1 %v4401_v46  ;;  %2478 = vmatpush1.bf16.msra.mxu0 %v4404_v47  ;;  %v4452_v46 = vld [vmem:[#allocation11 + $0x2a8] ss:$16 sps:$4 sm:$0xff]   ;;  %v4457_v47 = vld [vmem:[#allocation11 + $0x2c4] ss:$16 sps:$4 sm:$0xff]  }
 0x2c7   :  { %2397 = vmatprep.subr.bf16.mxu1 %v4409_v48  ;;  %2479 = vmatprep.subr.bf16.mxu0 %v4412_v49  ;;  %v4460_v48 = vld [vmem:[#allocation11 + $0x2cc] ss:$16 sps:$4 sm:$0xff]   ;;  %v4455_v49 = vld [vmem:[#allocation11 + $0x2c0] ss:$16 sps:$4 sm:$0xff]  }
 0x2ca   :  { %2398 = vmatpush1.bf16.msra.mxu1 %v4407_v50  ;;  %2480 = vmatpush1.bf16.msra.mxu0 %v4410_v51  ;;  %v4458_v50 = vld [vmem:[#allocation11 + $0x2c8] ss:$16 sps:$4 sm:$0xff]   ;;  %v4463_v51 = vld [vmem:[#allocation11 + $0x2e4] ss:$16 sps:$4 sm:$0xff]  }
 0x2cb   :  { %2399 = vmatprep.subr.bf16.mxu1 %v4415_v52  ;;  %2481 = vmatprep.subr.bf16.mxu0 %v4418_v53  ;;  %v4466_v52 = vld [vmem:[#allocation11 + $0x2ec] ss:$16 sps:$4 sm:$0xff]   ;;  %v4461_v53 = vld [vmem:[#allocation11 + $0x2e0] ss:$16 sps:$4 sm:$0xff]  }
 0x2ce   :  { %2400 = vmatpush1.bf16.msra.mxu1 %v4413_v54  ;;  %2482 = vmatpush1.bf16.msra.mxu0 %v4416_v55  ;;  %v4464_v54 = vld [vmem:[#allocation11 + $0x2e8] ss:$16 sps:$4 sm:$0xff]   ;;  %v4469_v55 = vld [vmem:[#allocation11 + $0x304] ss:$16 sps:$4 sm:$0xff]  }
 0x2cf   :  { %2410 = vmatprep.subr.bf16.mxu1 %v4421_v56  ;;  %2492 = vmatprep.subr.bf16.mxu0 %v4424_v59  ;;  %v4472_v56 = vld [vmem:[#allocation11 + $0x30c] ss:$16 sps:$4 sm:$0xff]   ;;  %v4467_v59 = vld [vmem:[#allocation11 + $0x300] ss:$16 sps:$4 sm:$0xff]  }
 0x364   :  { %v1470_v1 = vpop.f32.mrb[4].mxu1  ;;  %v5116_v2 = vpop.f32.mrb[8].mxu0 }
 0x365   :  { %v4019_v3 = vadd.f32 %v1470_v1, %v738_v62  ;;  %v1472_v4 = vpop.f32.mrb[5].mxu1  ;;  %v1554_v5 = vpop.f32.mrb[9].mxu0  ;;  %v4470_v62 = vld [vmem:[#allocation11 + $0x308] ss:$16 sps:$4 sm:$0xff]   ;;  %v4473_v1 = vld [vmem:[#allocation11 + $0x320] ss:$16 sps:$4 sm:$0xff]  }
 0x366   :  { %v4020_v6 = vadd.f32 %v1472_v4, %v742_v63  ;;  %v4022_v7 = vadd.f32 %v1554_v5, %v750_v0  ;;  %v1474_v8 = vpop.f32.mrb[6].mxu1  ;;  %v1556_v9 = vpop.f32.mrb[10].mxu0  ;;  %v4475_v63 = vld [vmem:[#allocation11 + $0x324] ss:$16 sps:$4 sm:$0xff]   ;;  %v4478_v0 = vld [vmem:[#allocation11 + $0x32c] ss:$16 sps:$4 sm:$0xff]  }
 0x367   :  { %vm1559_vm9 = vcmp.ne.f32.partialorder %v4019_v3, %v4019_v3  ;;  %v1475_v10 = vpop.f32.mrb[7].mxu1  ;;  %v1557_v11 = vpop.f32.mrb[11].mxu0  ;;  %v4481_v4 = vld [vmem:[#allocation11 + $0x344] ss:$16 sps:$4 sm:$0xff]   ;;  %v4484_v5 = vld [vmem:[#allocation11 + $0x34c] ss:$16 sps:$4 sm:$0xff]  }
 0x368   :  { %v1563_v12 = vsel %vm1559_vm9, 0.0, %v4019_v3  ;;  %vm1560_vm10 = vcmp.ne.f32.partialorder %v4020_v6, %v4020_v6  ;;  %vm1562_vm11 = vcmp.ne.f32.partialorder %v4022_v7, %v4022_v7  ;;  %v4476_v3 = vld [vmem:[#allocation11 + $0x328] ss:$16 sps:$4 sm:$0xff]   ;;  %v4487_v8 = vld [vmem:[#allocation11 + $0x364] ss:$16 sps:$4 sm:$0xff]   ;;  %v746_v10 = vrot.slane %v5108_v61, %v5100_v26 }
 0x369   :  { %v1567_v13 = vmax.f32 %v1563_v12, 0.0  ;;  %v1564_v14 = vsel %vm1560_vm10, 0.0, %v4020_v6  ;;  %v1566_v15 = vsel %vm1562_vm11, 0.0, %v4022_v7  ;;  %v4479_v6 = vld [vmem:[#allocation11 + $0x340] ss:$16 sps:$4 sm:$0xff]  }
 0x36a   :  { %v1568_v18 = vmax.f32 %v1564_v14, 0.0  ;;  %v1570_v19 = vmax.f32 %v1566_v15, 0.0  ;;  %v4482_v7 = vld [vmem:[#allocation11 + $0x348] ss:$16 sps:$4 sm:$0xff]   ;;  %v4490_v9 = vld [vmem:[#allocation11 + $0x36c] ss:$16 sps:$4 sm:$0xff]   ;;  %v4021_v15 = vadd.f32 %v5116_v2, %v746_v10 }
 0x36b   :  { %v1571_v20 = vmin.f32 %v1567_v13, 3.4028235e+38  ;;  %v4485_v11 = vld [vmem:[#allocation11 + $0x360] ss:$16 sps:$4 sm:$0xff]   ;;  %v4488_v12 = vld [vmem:[#allocation11 + $0x368] ss:$16 sps:$4 sm:$0xff]  }
 0x36c   :  { %v1572_v21 = vmin.f32 %v1568_v18, 3.4028235e+38  ;;  %v1574_v23 = vmin.f32 %v1570_v19, 3.4028235e+38  ;;  %v4493_v13 = vld [vmem:[#allocation11 + $0x384] ss:$16 sps:$4 sm:$0xff]   ;;  %vm1561_vm12 = vcmp.ne.f32.partialorder %v4021_v15, %v4021_v15 }
 0x36d   :  { %v1575_v28 = vpack.c.bf16 %v1571_v20, %v1571_v20  ;;  %v4496_v14 = vld [vmem:[#allocation11 + $0x38c] ss:$16 sps:$4 sm:$0xff]   ;;  %v4491_v18 = vld [vmem:[#allocation11 + $0x380] ss:$16 sps:$4 sm:$0xff]   ;;  %v4494_v19 = vld [vmem:[#allocation11 + $0x388] ss:$16 sps:$4 sm:$0xff]  }
 0x36e   :  { %v1576_v24 = vpack.c.bf16 %v1572_v21, %v1572_v21  ;;  %v1578_v31 = vpack.c.bf16 %v1574_v23, %v1574_v23  ;;  %v4499_v20 = vld [vmem:[#allocation11 + $0x3a4] ss:$16 sps:$4 sm:$0xff]   ;;  %v4502_v21 = vld [vmem:[#allocation11 + $0x3ac] ss:$16 sps:$4 sm:$0xff]   ;;  %v4497_v61 = vld [vmem:[#allocation11 + $0x3a0] ss:$16 sps:$4 sm:$0xff]  }
 0x36f   :  { %v4500_v23 = vld [vmem:[#allocation11 + $0x3a8] ss:$16 sps:$4 sm:$0xff]   ;;  %v4503_v2 = vld [vmem:[#allocation11 + $0x3c0] ss:$16 sps:$4 sm:$0xff]   ;;  %v4571_v10 = vld [vmem:[#allocation13 + $0x124] ss:$16 sps:$4 sm:$0xff]  }
 0x370   :  { %2401 = vmatprep.mubr.bf16.mxu1 %v1576_v24  ;;  %2483 = vmatprep.mubr.bf16.mxu0 %v1576_v24  ;;  %v4505_v24 = vld [vmem:[#allocation11 + $0x3c4] ss:$16 sps:$4 sm:$0xff]  }
 0x371   :  { %2402 = vmatmul.mubr.bf16.vlgmr.msra.gmra.mrb[8].mxu1 %v1575_v28  ;;  %2484 = vmatmul.mubr.bf16.vlgmr.msra.gmra.mrb[12].mxu0 %v1575_v28  ;;  %v4506_v28 = vld [vmem:[#allocation11 + $0x3c8] ss:$16 sps:$4 sm:$0xff]  }
 0x372   :  { %2411 = vmatpush1.bf16.msra.mxu1 %v4419_v25  ;;  %2493 = vmatpush1.bf16.msra.mxu0 %v4422_v27  ;;  %v4508_v25 = vld [vmem:[#allocation11 + $0x3cc] ss:$16 sps:$4 sm:$0xff]   ;;  %v1565_v27 = vsel %vm1561_vm12, 0.0, %v4021_v15 }
 0x373   :  { %2442 = vmatprep.mubr.bf16.mxu1 %v1578_v31  ;;  %2524 = vmatprep.mubr.bf16.mxu0 %v1578_v31  ;;  %v4514_v31 = vld [vmem:[#allocation11 + $0x3ec] ss:$16 sps:$4 sm:$0xff]  }
 0x374   :  { %2412 = vmatprep.subr.bf16.mxu1 %v4427_v29  ;;  %2494 = vmatprep.subr.bf16.mxu0 %v4430_v30  ;;  %v1569_v29 = vmax.f32 %v1565_v27, 0.0  ;;  %v4511_v30 = vld [vmem:[#allocation11 + $0x3e4] ss:$16 sps:$4 sm:$0xff]   ;;  %v4580_v15 = vld [vmem:[#allocation13 + $0x14c] ss:$16 sps:$4 sm:$0xff]  }
 0x375   :  { %v4587_v27 = vld [vmem:[#allocation13 + $0x180] ss:$16 sps:$4 sm:$0xff]  }
 0x376   :  { %2413 = vmatpush1.bf16.msra.mxu1 %v4425_v32  ;;  %2495 = vmatpush1.bf16.msra.mxu0 %v4428_v33  ;;  %v4509_v32 = vld [vmem:[#allocation11 + $0x3e0] ss:$16 sps:$4 sm:$0xff]   ;;  %v4512_v33 = vld [vmem:[#allocation11 + $0x3e8] ss:$16 sps:$4 sm:$0xff]  }
 0x377   :  { %2414 = vmatprep.subr.bf16.mxu1 %v4433_v34  ;;  %2496 = vmatprep.subr.bf16.mxu0 %v4436_v57  ;;  %v1573_v34 = vmin.f32 %v1569_v29, 3.4028235e+38  ;;  %v4517_v57 = vld [vmem:[#allocation13 + $0x4] ss:$16 sps:$4 sm:$0xff]   ;;  %v4598_v29 = vld [vmem:[#allocation13 + $0x1ac] ss:$16 sps:$4 sm:$0xff]  }
 0x37a   :  { %2415 = vmatpush1.bf16.msra.mxu1 %v4431_v35  ;;  %2497 = vmatpush1.bf16.msra.mxu0 %v4434_v36  ;;  %v4520_v35 = vld [vmem:[#allocation13 + $0xc] ss:$16 sps:$4 sm:$0xff]   ;;  %v4515_v36 = vld [vmem:[#allocation13] ss:$16 sps:$4 sm:$0xff]  }
 0x37b   :  { %2416 = vmatprep.subr.bf16.mxu1 %v4439_v37  ;;  %2498 = vmatprep.subr.bf16.mxu0 %v4442_v38  ;;  %v4518_v37 = vld [vmem:[#allocation13 + $0x8] ss:$16 sps:$4 sm:$0xff]   ;;  %v1577_v38 = vpack.c.bf16 %v1573_v34, %v1573_v34  ;;  %v4599_v34 = vld [vmem:[#allocation13 + $0x1c0] ss:$16 sps:$4 sm:$0xff]  }
 0x37e   :  { %2417 = vmatpush1.bf16.msra.mxu1 %v4437_v39  ;;  %2499 = vmatpush1.bf16.msra.mxu0 %v4440_v16  ;;  %v4523_v39 = vld [vmem:[#allocation13 + $0x24] ss:$16 sps:$4 sm:$0xff]   ;;  %v4526_v16 = vld [vmem:[#allocation13 + $0x2c] ss:$16 sps:$4 sm:$0xff]  }
 0x37f   :  { %2418 = vmatprep.subr.bf16.mxu1 %v4445_v40  ;;  %2500 = vmatprep.subr.bf16.mxu0 %v4448_v41  ;;  %v4521_v40 = vld [vmem:[#allocation13 + $0x20] ss:$16 sps:$4 sm:$0xff]   ;;  %v4524_v41 = vld [vmem:[#allocation13 + $0x28] ss:$16 sps:$4 sm:$0xff]  }
 0x382   :  { %2419 = vmatpush1.bf16.msra.mxu1 %v4443_v42  ;;  %2501 = vmatpush1.bf16.msra.mxu0 %v4446_v43  ;;  %v4529_v42 = vld [vmem:[#allocation13 + $0x44] ss:$16 sps:$4 sm:$0xff]   ;;  %v4532_v43 = vld [vmem:[#allocation13 + $0x4c] ss:$16 sps:$4 sm:$0xff]  }
 0x383   :  { %2420 = vmatprep.subr.bf16.mxu1 %v4451_v22  ;;  %2502 = vmatprep.subr.bf16.mxu0 %v4454_v44  ;;  %v4527_v22 = vld [vmem:[#allocation13 + $0x40] ss:$16 sps:$4 sm:$0xff]   ;;  %v4530_v44 = vld [vmem:[#allocation13 + $0x48] ss:$16 sps:$4 sm:$0xff]  }
 0x386   :  { %2421 = vmatpush1.bf16.msra.mxu1 %v4449_v45  ;;  %2503 = vmatpush1.bf16.msra.mxu0 %v4452_v46  ;;  %v4535_v45 = vld [vmem:[#allocation13 + $0x64] ss:$16 sps:$4 sm:$0xff]   ;;  %v4538_v46 = vld [vmem:[#allocation13 + $0x6c] ss:$16 sps:$4 sm:$0xff]  }
 0x387   :  { %2422 = vmatprep.subr.bf16.mxu1 %v4457_v47  ;;  %2504 = vmatprep.subr.bf16.mxu0 %v4460_v48  ;;  %v4533_v47 = vld [vmem:[#allocation13 + $0x60] ss:$16 sps:$4 sm:$0xff]   ;;  %v4536_v48 = vld [vmem:[#allocation13 + $0x68] ss:$16 sps:$4 sm:$0xff]  }
 0x38a   :  { %2423 = vmatpush1.bf16.msra.mxu1 %v4455_v49  ;;  %2505 = vmatpush1.bf16.msra.mxu0 %v4458_v50  ;;  %v4541_v49 = vld [vmem:[#allocation13 + $0x84] ss:$16 sps:$4 sm:$0xff]   ;;  %v4544_v50 = vld [vmem:[#allocation13 + $0x8c] ss:$16 sps:$4 sm:$0xff]  }
 0x38b   :  { %2424 = vmatprep.subr.bf16.mxu1 %v4463_v51  ;;  %2506 = vmatprep.subr.bf16.mxu0 %v4466_v52  ;;  %v4539_v51 = vld [vmem:[#allocation13 + $0x80] ss:$16 sps:$4 sm:$0xff]   ;;  %v4542_v52 = vld [vmem:[#allocation13 + $0x88] ss:$16 sps:$4 sm:$0xff]  }
 0x38e   :  { %2425 = vmatpush1.bf16.msra.mxu1 %v4461_v53  ;;  %2507 = vmatpush1.bf16.msra.mxu0 %v4464_v54  ;;  %v4547_v53 = vld [vmem:[#allocation13 + $0xa4] ss:$16 sps:$4 sm:$0xff]   ;;  %v4550_v54 = vld [vmem:[#allocation13 + $0xac] ss:$16 sps:$4 sm:$0xff]  }
 0x38f   :  { %2426 = vmatprep.subr.bf16.mxu1 %v4469_v55  ;;  %2508 = vmatprep.subr.bf16.mxu0 %v4472_v56  ;;  %v4545_v55 = vld [vmem:[#allocation13 + $0xa0] ss:$16 sps:$4 sm:$0xff]   ;;  %v4548_v56 = vld [vmem:[#allocation13 + $0xa8] ss:$16 sps:$4 sm:$0xff]  }
 0x392   :  { %2427 = vmatpush1.bf16.msra.mxu1 %v4467_v59  ;;  %2509 = vmatpush1.bf16.msra.mxu0 %v4470_v62  ;;  %v4553_v59 = vld [vmem:[#allocation13 + $0xc4] ss:$16 sps:$4 sm:$0xff]   ;;  %v4556_v62 = vld [vmem:[#allocation13 + $0xcc] ss:$16 sps:$4 sm:$0xff]  }
 0x393   :  { %2428 = vmatprep.subr.bf16.mxu1 %v4475_v63  ;;  %2510 = vmatprep.subr.bf16.mxu0 %v4478_v0  ;;  %v4551_v63 = vld [vmem:[#allocation13 + $0xc0] ss:$16 sps:$4 sm:$0xff]   ;;  %v4554_v0 = vld [vmem:[#allocation13 + $0xc8] ss:$16 sps:$4 sm:$0xff]  }
 0x396   :  { %2429 = vmatpush1.bf16.msra.mxu1 %v4473_v1  ;;  %2511 = vmatpush1.bf16.msra.mxu0 %v4476_v3  ;;  %v4559_v1 = vld [vmem:[#allocation13 + $0xe4] ss:$16 sps:$4 sm:$0xff]   ;;  %v4562_v3 = vld [vmem:[#allocation13 + $0xec] ss:$16 sps:$4 sm:$0xff]  }
 0x397   :  { %2430 = vmatprep.subr.bf16.mxu1 %v4481_v4  ;;  %2512 = vmatprep.subr.bf16.mxu0 %v4484_v5  ;;  %v4557_v4 = vld [vmem:[#allocation13 + $0xe0] ss:$16 sps:$4 sm:$0xff]   ;;  %v4560_v5 = vld [vmem:[#allocation13 + $0xe8] ss:$16 sps:$4 sm:$0xff]  }
 0x39a   :  { %2431 = vmatpush1.bf16.msra.mxu1 %v4479_v6  ;;  %2513 = vmatpush1.bf16.msra.mxu0 %v4482_v7  ;;  %v4565_v6 = vld [vmem:[#allocation13 + $0x104] ss:$16 sps:$4 sm:$0xff]   ;;  %v4568_v7 = vld [vmem:[#allocation13 + $0x10c] ss:$16 sps:$4 sm:$0xff]  }
 0x39b   :  { %2432 = vmatprep.subr.bf16.mxu1 %v4487_v8  ;;  %2514 = vmatprep.subr.bf16.mxu0 %v4490_v9  ;;  %v4563_v8 = vld [vmem:[#allocation13 + $0x100] ss:$16 sps:$4 sm:$0xff]   ;;  %v4566_v9 = vld [vmem:[#allocation13 + $0x108] ss:$16 sps:$4 sm:$0xff]  }
 0x39e   :  { %2433 = vmatpush1.bf16.msra.mxu1 %v4485_v11  ;;  %2515 = vmatpush1.bf16.msra.mxu0 %v4488_v12  ;;  %v4574_v11 = vld [vmem:[#allocation13 + $0x12c] ss:$16 sps:$4 sm:$0xff]   ;;  %v4569_v12 = vld [vmem:[#allocation13 + $0x120] ss:$16 sps:$4 sm:$0xff]  }
 0x39f   :  { %2434 = vmatprep.subr.bf16.mxu1 %v4493_v13  ;;  %2516 = vmatprep.subr.bf16.mxu0 %v4496_v14  ;;  %v4572_v13 = vld [vmem:[#allocation13 + $0x128] ss:$16 sps:$4 sm:$0xff]   ;;  %v4577_v14 = vld [vmem:[#allocation13 + $0x144] ss:$16 sps:$4 sm:$0xff]  }
 0x3a2   :  { %2435 = vmatpush1.bf16.msra.mxu1 %v4491_v18  ;;  %2517 = vmatpush1.bf16.msra.mxu0 %v4494_v19  ;;  %v4575_v18 = vld [vmem:[#allocation13 + $0x140] ss:$16 sps:$4 sm:$0xff]   ;;  %v4578_v19 = vld [vmem:[#allocation13 + $0x148] ss:$16 sps:$4 sm:$0xff]  }
 0x3a3   :  { %2436 = vmatprep.subr.bf16.mxu1 %v4499_v20  ;;  %2518 = vmatprep.subr.bf16.mxu0 %v4502_v21  ;;  %v4583_v20 = vld [vmem:[#allocation13 + $0x164] ss:$16 sps:$4 sm:$0xff]   ;;  %v4586_v21 = vld [vmem:[#allocation13 + $0x16c] ss:$16 sps:$4 sm:$0xff]  }
 0x3a6   :  { %2437 = vmatpush1.bf16.msra.mxu1 %v4497_v61  ;;  %2519 = vmatpush1.bf16.msra.mxu0 %v4500_v23  ;;  %v4581_v61 = vld [vmem:[#allocation13 + $0x160] ss:$16 sps:$4 sm:$0xff]   ;;  %v4584_v23 = vld [vmem:[#allocation13 + $0x168] ss:$16 sps:$4 sm:$0xff]  }
 0x3a7   :  { %2438 = vmatprep.subr.bf16.mxu1 %v4505_v24  ;;  %2520 = vmatprep.subr.bf16.mxu0 %v4508_v25  ;;  %v4589_v24 = vld [vmem:[#allocation13 + $0x184] ss:$16 sps:$4 sm:$0xff]   ;;  %v4592_v25 = vld [vmem:[#allocation13 + $0x18c] ss:$16 sps:$4 sm:$0xff]  }
 0x3aa   :  { %2439 = vmatpush1.bf16.msra.mxu1 %v4503_v2  ;;  %2521 = vmatpush1.bf16.msra.mxu0 %v4506_v28  ;;  %v4590_v2 = vld [vmem:[#allocation13 + $0x188] ss:$16 sps:$4 sm:$0xff]   ;;  %v4595_v28 = vld [vmem:[#allocation13 + $0x1a4] ss:$16 sps:$4 sm:$0xff]  }
 0x3ab   :  { %2440 = vmatprep.subr.bf16.mxu1 %v4511_v30  ;;  %2522 = vmatprep.subr.bf16.mxu0 %v4514_v31  ;;  %v4593_v30 = vld [vmem:[#allocation13 + $0x1a0] ss:$16 sps:$4 sm:$0xff]   ;;  %v4596_v31 = vld [vmem:[#allocation13 + $0x1a8] ss:$16 sps:$4 sm:$0xff]  }
 0x3ae   :  { %2441 = vmatpush1.bf16.msra.mxu1 %v4509_v32  ;;  %2523 = vmatpush1.bf16.msra.mxu0 %v4512_v33  ;;  %v4601_v32 = vld [vmem:[#allocation13 + $0x1c4] ss:$16 sps:$4 sm:$0xff]   ;;  %v4604_v33 = vld [vmem:[#allocation13 + $0x1cc] ss:$16 sps:$4 sm:$0xff]  }
 0x3af   :  { %3343 = vmatprep.subr.bf16.mxu1 %v4517_v57  ;;  %3425 = vmatprep.subr.bf16.mxu0 %v4520_v35  ;;  %v4602_v57 = vld [vmem:[#allocation13 + $0x1c8] ss:$16 sps:$4 sm:$0xff]   ;;  %v4607_v35 = vld [vmem:[#allocation13 + $0x1e4] ss:$16 sps:$4 sm:$0xff]  }
 0x3b1   :  { %2443 = vmatmul.mubr.bf16.vlgmr.msra.gmra.mrb[8].mxu1 %v1577_v38  ;;  %2525 = vmatmul.mubr.bf16.vlgmr.msra.gmra.mrb[12].mxu0 %v1577_v38  ;;  %v4608_v38 = vld [vmem:[#allocation13 + $0x1e8] ss:$16 sps:$4 sm:$0xff]  }
 0x3b2   :  { %3344 = vmatpush1.bf16.msra.mxu1 %v4515_v36  ;;  %3426 = vmatpush1.bf16.msra.mxu0 %v4518_v37  ;;  %v4610_v36 = vld [vmem:[#allocation13 + $0x1ec] ss:$16 sps:$4 sm:$0xff]   ;;  %v4605_v37 = vld [vmem:[#allocation13 + $0x1e0] ss:$16 sps:$4 sm:$0xff]  }
 0x3b3   :  { %3345 = vmatprep.subr.bf16.mxu1 %v4523_v39  ;;  %3427 = vmatprep.subr.bf16.mxu0 %v4526_v16  ;;  %v4613_v39 = vld [vmem:[#allocation13 + $0x204] ss:$16 sps:$4 sm:$0xff]   ;;  %v4616_v16 = vld [vmem:[#allocation13 + $0x20c] ss:$16 sps:$4 sm:$0xff]  }
 0x3b6   :  { %3346 = vmatpush1.bf16.msra.mxu1 %v4521_v40  ;;  %3428 = vmatpush1.bf16.msra.mxu0 %v4524_v41  ;;  %v5124_v40 = vld [vmem:[%s5167_s9] sm:$0xf] }
 0x3b7   :  { %3347 = vmatprep.subr.bf16.mxu1 %v4529_v42  ;;  %3429 = vmatprep.subr.bf16.mxu0 %v4532_v43  ;;  %v1712_v41 = vrot.slane %v5124_v40, %v5076_v58  ;;  %v1716_v42 = vrot.slane %v5124_v40, %v5079_v60  ;;  %v1724_v43 = vrot.slane %v5124_v40, %v5089_v17 }
 0x3ba   :  { %3348 = vmatpush1.bf16.msra.mxu1 %v4527_v22  ;;  %3430 = vmatpush1.bf16.msra.mxu0 %v4530_v44 }
 0x3bb   :  { %3349 = vmatprep.subr.bf16.mxu1 %v4535_v45  ;;  %3431 = vmatprep.subr.bf16.mxu0 %v4538_v46 }
 0x3be   :  { %3350 = vmatpush1.bf16.msra.mxu1 %v4533_v47  ;;  %3432 = vmatpush1.bf16.msra.mxu0 %v4536_v48 }
 0x3bf   :  { %3351 = vmatprep.subr.bf16.mxu1 %v4541_v49  ;;  %3433 = vmatprep.subr.bf16.mxu0 %v4544_v50 }
 0x3c2   :  { %3352 = vmatpush1.bf16.msra.mxu1 %v4539_v51  ;;  %3434 = vmatpush1.bf16.msra.mxu0 %v4542_v52 }
 0x3c3   :  { %3353 = vmatprep.subr.bf16.mxu1 %v4547_v53  ;;  %3435 = vmatprep.subr.bf16.mxu0 %v4550_v54 }
 0x3c6   :  { %3354 = vmatpush1.bf16.msra.mxu1 %v4545_v55  ;;  %3436 = vmatpush1.bf16.msra.mxu0 %v4548_v56 }
 0x3c7   :  { %3355 = vmatprep.subr.bf16.mxu1 %v4553_v59  ;;  %3437 = vmatprep.subr.bf16.mxu0 %v4556_v62 }
 0x3ca   :  { %3356 = vmatpush1.bf16.msra.mxu1 %v4551_v63  ;;  %3438 = vmatpush1.bf16.msra.mxu0 %v4554_v0 }
 0x3cb   :  { %3357 = vmatprep.subr.bf16.mxu1 %v4559_v1  ;;  %3439 = vmatprep.subr.bf16.mxu0 %v4562_v3 }
 0x3ce   :  { %3358 = vmatpush1.bf16.msra.mxu1 %v4557_v4  ;;  %3440 = vmatpush1.bf16.msra.mxu0 %v4560_v5  ;;  %v4611_v5 = vld [vmem:[#allocation13 + $0x200] ss:$16 sps:$4 sm:$0xff]  }
 0x3cf   :  { %3359 = vmatprep.subr.bf16.mxu1 %v4565_v6  ;;  %3441 = vmatprep.subr.bf16.mxu0 %v4568_v7  ;;  %v4614_v6 = vld [vmem:[#allocation13 + $0x208] ss:$16 sps:$4 sm:$0xff]  }
 0x3d2   :  { %3360 = vmatpush1.bf16.msra.mxu1 %v4563_v8  ;;  %3442 = vmatpush1.bf16.msra.mxu0 %v4566_v9  ;;  %v4619_v8 = vld [vmem:[#allocation13 + $0x224] ss:$16 sps:$4 sm:$0xff]   ;;  %v4622_v9 = vld [vmem:[#allocation13 + $0x22c] ss:$16 sps:$4 sm:$0xff]  }
 0x3d3   :  { %3361 = vmatprep.subr.bf16.mxu1 %v4571_v10  ;;  %3443 = vmatprep.subr.bf16.mxu0 %v4574_v11  ;;  %v4617_v11 = vld [vmem:[#allocation13 + $0x220] ss:$16 sps:$4 sm:$0xff]  }
 0x3d6   :  { %3362 = vmatpush1.bf16.msra.mxu1 %v4569_v12  ;;  %3444 = vmatpush1.bf16.msra.mxu0 %v4572_v13  ;;  %v4620_v12 = vld [vmem:[#allocation13 + $0x228] ss:$16 sps:$4 sm:$0xff]   ;;  %v4625_v13 = vld [vmem:[#allocation13 + $0x244] ss:$16 sps:$4 sm:$0xff]  }
 0x3d7   :  { %3363 = vmatprep.subr.bf16.mxu1 %v4577_v14  ;;  %3445 = vmatprep.subr.bf16.mxu0 %v4580_v15  ;;  %v4628_v14 = vld [vmem:[#allocation13 + $0x24c] ss:$16 sps:$4 sm:$0xff]   ;;  %v4623_v15 = vld [vmem:[#allocation13 + $0x240] ss:$16 sps:$4 sm:$0xff]  }
 0x3da   :  { %3364 = vmatpush1.bf16.msra.mxu1 %v4575_v18  ;;  %3446 = vmatpush1.bf16.msra.mxu0 %v4578_v19  ;;  %v4626_v18 = vld [vmem:[#allocation13 + $0x248] ss:$16 sps:$4 sm:$0xff]   ;;  %v4631_v19 = vld [vmem:[#allocation13 + $0x264] ss:$16 sps:$4 sm:$0xff]  }
 0x3db   :  { %3365 = vmatprep.subr.bf16.mxu1 %v4583_v20  ;;  %3447 = vmatprep.subr.bf16.mxu0 %v4586_v21  ;;  %v4634_v20 = vld [vmem:[#allocation13 + $0x26c] ss:$16 sps:$4 sm:$0xff]   ;;  %v4629_v21 = vld [vmem:[#allocation13 + $0x260] ss:$16 sps:$4 sm:$0xff]  }
 0x3de   :  { %3366 = vmatpush1.bf16.msra.mxu1 %v4581_v61  ;;  %3448 = vmatpush1.bf16.msra.mxu0 %v4584_v23  ;;  %v4632_v61 = vld [vmem:[#allocation13 + $0x268] ss:$16 sps:$4 sm:$0xff]   ;;  %v4637_v23 = vld [vmem:[#allocation13 + $0x284] ss:$16 sps:$4 sm:$0xff]  }
 0x3df   :  { %3367 = vmatprep.subr.bf16.mxu1 %v4589_v24  ;;  %3449 = vmatprep.subr.bf16.mxu0 %v4592_v25  ;;  %v4640_v24 = vld [vmem:[#allocation13 + $0x28c] ss:$16 sps:$4 sm:$0xff]   ;;  %v4635_v25 = vld [vmem:[#allocation13 + $0x280] ss:$16 sps:$4 sm:$0xff]  }
 0x3e2   :  { %3368 = vmatpush1.bf16.msra.mxu1 %v4587_v27  ;;  %3450 = vmatpush1.bf16.msra.mxu0 %v4590_v2  ;;  %v4638_v27 = vld [vmem:[#allocation13 + $0x288] ss:$16 sps:$4 sm:$0xff]   ;;  %v4643_v2 = vld [vmem:[#allocation13 + $0x2a4] ss:$16 sps:$4 sm:$0xff]  }
 0x3e3   :  { %3369 = vmatprep.subr.bf16.mxu1 %v4595_v28  ;;  %3451 = vmatprep.subr.bf16.mxu0 %v4598_v29  ;;  %v4646_v28 = vld [vmem:[#allocation13 + $0x2ac] ss:$16 sps:$4 sm:$0xff]   ;;  %v4641_v29 = vld [vmem:[#allocation13 + $0x2a0] ss:$16 sps:$4 sm:$0xff]  }
 0x3e6   :  { %3370 = vmatpush1.bf16.msra.mxu1 %v4593_v30  ;;  %3452 = vmatpush1.bf16.msra.mxu0 %v4596_v31  ;;  %v4644_v30 = vld [vmem:[#allocation13 + $0x2a8] ss:$16 sps:$4 sm:$0xff]   ;;  %v4649_v31 = vld [vmem:[#allocation13 + $0x2c4] ss:$16 sps:$4 sm:$0xff]  }
 0x3e7   :  { %3371 = vmatprep.subr.bf16.mxu1 %v4601_v32  ;;  %3453 = vmatprep.subr.bf16.mxu0 %v4604_v33  ;;  %v4652_v32 = vld [vmem:[#allocation13 + $0x2cc] ss:$16 sps:$4 sm:$0xff]   ;;  %v4647_v33 = vld [vmem:[#allocation13 + $0x2c0] ss:$16 sps:$4 sm:$0xff]  }
 0x3ea   :  { %3372 = vmatpush1.bf16.msra.mxu1 %v4599_v34  ;;  %3454 = vmatpush1.bf16.msra.mxu0 %v4602_v57  ;;  %v4650_v34 = vld [vmem:[#allocation13 + $0x2c8] ss:$16 sps:$4 sm:$0xff]   ;;  %v4655_v57 = vld [vmem:[#allocation13 + $0x2e4] ss:$16 sps:$4 sm:$0xff]  }
 0x3eb   :  { %3373 = vmatprep.subr.bf16.mxu1 %v4607_v35  ;;  %3455 = vmatprep.subr.bf16.mxu0 %v4610_v36  ;;  %v4658_v35 = vld [vmem:[#allocation13 + $0x2ec] ss:$16 sps:$4 sm:$0xff]   ;;  %v4653_v36 = vld [vmem:[#allocation13 + $0x2e0] ss:$16 sps:$4 sm:$0xff]  }
 0x3ee   :  { %3374 = vmatpush1.bf16.msra.mxu1 %v4605_v37  ;;  %3456 = vmatpush1.bf16.msra.mxu0 %v4608_v38  ;;  %v4656_v37 = vld [vmem:[#allocation13 + $0x2e8] ss:$16 sps:$4 sm:$0xff]   ;;  %v4661_v38 = vld [vmem:[#allocation13 + $0x304] ss:$16 sps:$4 sm:$0xff]  }
 0x3ef   :  { %3384 = vmatprep.subr.bf16.mxu1 %v4613_v39  ;;  %3466 = vmatprep.subr.bf16.mxu0 %v4616_v16  ;;  %v4664_v39 = vld [vmem:[#allocation13 + $0x30c] ss:$16 sps:$4 sm:$0xff]   ;;  %v4659_v16 = vld [vmem:[#allocation13 + $0x300] ss:$16 sps:$4 sm:$0xff]  }
 0x484   :  { %v2444_v22 = vpop.f32.mrb[8].mxu1  ;;  %v5132_v44 = vpop.f32.mrb[12].mxu0 }
 0x485   :  { %v4023_v45 = vadd.f32 %v2444_v22, %v1712_v41  ;;  %v2446_v46 = vpop.f32.mrb[9].mxu1  ;;  %v2528_v47 = vpop.f32.mrb[13].mxu0  ;;  %v4662_v41 = vld [vmem:[#allocation13 + $0x308] ss:$16 sps:$4 sm:$0xff]   ;;  %v4665_v22 = vld [vmem:[#allocation13 + $0x320] ss:$16 sps:$4 sm:$0xff]  }
 0x486   :  { %v4024_v48 = vadd.f32 %v2446_v46, %v1716_v42  ;;  %v4026_v49 = vadd.f32 %v2528_v47, %v1724_v43  ;;  %v2448_v50 = vpop.f32.mrb[10].mxu1  ;;  %v2530_v51 = vpop.f32.mrb[14].mxu0  ;;  %v4667_v42 = vld [vmem:[#allocation13 + $0x324] ss:$16 sps:$4 sm:$0xff]   ;;  %v4670_v43 = vld [vmem:[#allocation13 + $0x32c] ss:$16 sps:$4 sm:$0xff]  }
 0x487   :  { %vm2533_vm13 = vcmp.ne.f32.partialorder %v4023_v45, %v4023_v45  ;;  %v2449_v52 = vpop.f32.mrb[11].mxu1  ;;  %v2531_v53 = vpop.f32.mrb[15].mxu0  ;;  %v4673_v46 = vld [vmem:[#allocation13 + $0x344] ss:$16 sps:$4 sm:$0xff]   ;;  %v4676_v47 = vld [vmem:[#allocation13 + $0x34c] ss:$16 sps:$4 sm:$0xff]  }
 0x488   :  { %v2537_v54 = vsel %vm2533_vm13, 0.0, %v4023_v45  ;;  %vm2534_vm14 = vcmp.ne.f32.partialorder %v4024_v48, %v4024_v48  ;;  %vm2536_vm15 = vcmp.ne.f32.partialorder %v4026_v49, %v4026_v49  ;;  %v4668_v45 = vld [vmem:[#allocation13 + $0x328] ss:$16 sps:$4 sm:$0xff]   ;;  %v4679_v50 = vld [vmem:[#allocation13 + $0x364] ss:$16 sps:$4 sm:$0xff]   ;;  %v1720_v52 = vrot.slane %v5124_v40, %v5100_v26 }
 0x489   :  { %v2541_v55 = vmax.f32 %v2537_v54, 0.0  ;;  %v2538_v56 = vsel %vm2534_vm14, 0.0, %v4024_v48  ;;  %v2540_v59 = vsel %vm2536_vm15, 0.0, %v4026_v49  ;;  %v4671_v48 = vld [vmem:[#allocation13 + $0x340] ss:$16 sps:$4 sm:$0xff]  }
 0x48a   :  { %v2542_v62 = vmax.f32 %v2538_v56, 0.0  ;;  %v2544_v63 = vmax.f32 %v2540_v59, 0.0  ;;  %v4674_v49 = vld [vmem:[#allocation13 + $0x348] ss:$16 sps:$4 sm:$0xff]   ;;  %v4682_v51 = vld [vmem:[#allocation13 + $0x36c] ss:$16 sps:$4 sm:$0xff]   ;;  %v4025_v59 = vadd.f32 %v5132_v44, %v1720_v52 }
 0x48b   :  { %v2545_v0 = vmin.f32 %v2541_v55, 3.4028235e+38  ;;  %v4677_v53 = vld [vmem:[#allocation13 + $0x360] ss:$16 sps:$4 sm:$0xff]   ;;  %v4680_v54 = vld [vmem:[#allocation13 + $0x368] ss:$16 sps:$4 sm:$0xff]  }
 0x48c   :  { %v2546_v1 = vmin.f32 %v2542_v62, 3.4028235e+38  ;;  %v2548_v3 = vmin.f32 %v2544_v63, 3.4028235e+38  ;;  %v4685_v55 = vld [vmem:[#allocation13 + $0x384] ss:$16 sps:$4 sm:$0xff]   ;;  %vm2535_vm0 = vcmp.ne.f32.partialorder %v4025_v59, %v4025_v59 }
 0x48d   :  { %v2549_v7 = vpack.c.bf16 %v2545_v0, %v2545_v0  ;;  %v4688_v56 = vld [vmem:[#allocation13 + $0x38c] ss:$16 sps:$4 sm:$0xff]   ;;  %v4683_v62 = vld [vmem:[#allocation13 + $0x380] ss:$16 sps:$4 sm:$0xff]   ;;  %v4686_v63 = vld [vmem:[#allocation13 + $0x388] ss:$16 sps:$4 sm:$0xff]  }
 0x48e   :  { %v2550_v4 = vpack.c.bf16 %v2546_v1, %v2546_v1  ;;  %v2552_v10 = vpack.c.bf16 %v2548_v3, %v2548_v3  ;;  %v4691_v0 = vld [vmem:[#allocation13 + $0x3a4] ss:$16 sps:$4 sm:$0xff]   ;;  %v4694_v1 = vld [vmem:[#allocation13 + $0x3ac] ss:$16 sps:$4 sm:$0xff]   ;;  %v4689_v40 = vld [vmem:[#allocation13 + $0x3a0] ss:$16 sps:$4 sm:$0xff]  }
 0x48f   :  { %v4692_v3 = vld [vmem:[#allocation13 + $0x3a8] ss:$16 sps:$4 sm:$0xff]   ;;  %v4695_v44 = vld [vmem:[#allocation13 + $0x3c0] ss:$16 sps:$4 sm:$0xff]  }
 0x490   :  { %3375 = vmatprep.mubr.bf16.mxu1 %v2550_v4  ;;  %3457 = vmatprep.mubr.bf16.mxu0 %v2550_v4  ;;  %v4697_v4 = vld [vmem:[#allocation13 + $0x3c4] ss:$16 sps:$4 sm:$0xff]  }
 0x491   :  { %3376 = vmatmul.mubr.bf16.vlgmr.msra.gmra.mrb[12].mxu1 %v2549_v7  ;;  %3458 = vmatmul.mubr.bf16.vlgmr.msra.gmra.mrb[16].mxu0 %v2549_v7  ;;  %v4698_v7 = vld [vmem:[#allocation13 + $0x3c8] ss:$16 sps:$4 sm:$0xff]  }
 0x492   :  { %3385 = vmatpush1.bf16.msra.mxu1 %v4611_v5  ;;  %3467 = vmatpush1.bf16.msra.mxu0 %v4614_v6  ;;  %v4700_v5 = vld [vmem:[#allocation13 + $0x3cc] ss:$16 sps:$4 sm:$0xff]   ;;  %v2539_v6 = vsel %vm2535_vm0, 0.0, %v4025_v59 }
 0x493   :  { %3416 = vmatprep.mubr.bf16.mxu1 %v2552_v10  ;;  %3498 = vmatprep.mubr.bf16.mxu0 %v2552_v10  ;;  %v4706_v10 = vld [vmem:[#allocation13 + $0x3ec] ss:$16 sps:$4 sm:$0xff]  }
 0x494   :  { %3386 = vmatprep.subr.bf16.mxu1 %v4619_v8  ;;  %3468 = vmatprep.subr.bf16.mxu0 %v4622_v9  ;;  %v2543_v8 = vmax.f32 %v2539_v6, 0.0  ;;  %v4703_v9 = vld [vmem:[#allocation13 + $0x3e4] ss:$16 sps:$4 sm:$0xff]  }
 0x496   :  { %3387 = vmatpush1.bf16.msra.mxu1 %v4617_v11  ;;  %3469 = vmatpush1.bf16.msra.mxu0 %v4620_v12  ;;  %v4701_v11 = vld [vmem:[#allocation13 + $0x3e0] ss:$16 sps:$4 sm:$0xff]   ;;  %v4704_v12 = vld [vmem:[#allocation13 + $0x3e8] ss:$16 sps:$4 sm:$0xff]  }
 0x497   :  { %3388 = vmatprep.subr.bf16.mxu1 %v4625_v13  ;;  %3470 = vmatprep.subr.bf16.mxu0 %v4628_v14  ;;  %v2547_v13 = vmin.f32 %v2543_v8, 3.4028235e+38 }
 0x499   :  { %v2551_v14 = vpack.c.bf16 %v2547_v13, %v2547_v13 }
 0x49a   :  { %3389 = vmatpush1.bf16.msra.mxu1 %v4623_v15  ;;  %3471 = vmatpush1.bf16.msra.mxu0 %v4626_v18  ;;  %v2681_v15 = vld [vmem:[%s5169_s11] sm:$0xf] }
 0x49b   :  { %3390 = vmatprep.subr.bf16.mxu1 %v4631_v19  ;;  %3472 = vmatprep.subr.bf16.mxu0 %v4634_v20  ;;  %v2686_v18 = vrot.slane %v2681_v15, %v5076_v58  ;;  %v2694_v19 = vrot.slane %v2681_v15, %v5100_v26  ;;  %v2690_v20 = vrot.slane %v2681_v15, %v5079_v60 }
 0x49e   :  { %3391 = vmatpush1.bf16.msra.mxu1 %v4629_v21  ;;  %3473 = vmatpush1.bf16.msra.mxu0 %v4632_v61  ;;  %v2698_v21 = vrot.slane %v2681_v15, %v5089_v17 }
 0x49f   :  { %3392 = vmatprep.subr.bf16.mxu1 %v4637_v23  ;;  %3474 = vmatprep.subr.bf16.mxu0 %v4640_v24  ;;  %v3523_v23 = vld [vmem:[%s5170_s12] sm:$0xf] }
 0x4a2   :  { %3393 = vmatpush1.bf16.msra.mxu1 %v4635_v25  ;;  %3475 = vmatpush1.bf16.msra.mxu0 %v4638_v27 }
 0x4a3   :  { %3394 = vmatprep.subr.bf16.mxu1 %v4643_v2  ;;  %3476 = vmatprep.subr.bf16.mxu0 %v4646_v28 }
 0x4a6   :  { %3395 = vmatpush1.bf16.msra.mxu1 %v4641_v29  ;;  %3477 = vmatpush1.bf16.msra.mxu0 %v4644_v30 }
 0x4a7   :  { %3396 = vmatprep.subr.bf16.mxu1 %v4649_v31  ;;  %3478 = vmatprep.subr.bf16.mxu0 %v4652_v32 }
 0x4aa   :  { %3397 = vmatpush1.bf16.msra.mxu1 %v4647_v33  ;;  %3479 = vmatpush1.bf16.msra.mxu0 %v4650_v34  ;;  %v3528_v33 = vrot.slane %v3523_v23, %v5076_v58 }
 0x4ab   :  { %3398 = vmatprep.subr.bf16.mxu1 %v4655_v57  ;;  %3480 = vmatprep.subr.bf16.mxu0 %v4658_v35 }
 0x4ae   :  { %3399 = vmatpush1.bf16.msra.mxu1 %v4653_v36  ;;  %3481 = vmatpush1.bf16.msra.mxu0 %v4656_v37 }
 0x4af   :  { %3400 = vmatprep.subr.bf16.mxu1 %v4661_v38  ;;  %3482 = vmatprep.subr.bf16.mxu0 %v4664_v39 }
 0x4b2   :  { %3401 = vmatpush1.bf16.msra.mxu1 %v4659_v16  ;;  %3483 = vmatpush1.bf16.msra.mxu0 %v4662_v41 }
 0x4b3   :  { %3402 = vmatprep.subr.bf16.mxu1 %v4667_v42  ;;  %3484 = vmatprep.subr.bf16.mxu0 %v4670_v43  ;;  %v3532_v42 = vrot.slane %v3523_v23, %v5079_v60 }
 0x4b6   :  { %3403 = vmatpush1.bf16.msra.mxu1 %v4665_v22  ;;  %3485 = vmatpush1.bf16.msra.mxu0 %v4668_v45  ;;  %v3536_v22 = vrot.slane %v3523_v23, %v5100_v26 }
 0x4b7   :  { %3404 = vmatprep.subr.bf16.mxu1 %v4673_v46  ;;  %3486 = vmatprep.subr.bf16.mxu0 %v4676_v47 }
 0x4ba   :  { %3405 = vmatpush1.bf16.msra.mxu1 %v4671_v48  ;;  %3487 = vmatpush1.bf16.msra.mxu0 %v4674_v49  ;;  %v3540_v48 = vrot.slane %v3523_v23, %v5089_v17 }
 0x4bb   :  { %3406 = vmatprep.subr.bf16.mxu1 %v4679_v50  ;;  %3488 = vmatprep.subr.bf16.mxu0 %v4682_v51 }
 0x4be   :  { %3407 = vmatpush1.bf16.msra.mxu1 %v4677_v53  ;;  %3489 = vmatpush1.bf16.msra.mxu0 %v4680_v54 }
 0x4bf   :  { %3408 = vmatprep.subr.bf16.mxu1 %v4685_v55  ;;  %3490 = vmatprep.subr.bf16.mxu0 %v4688_v56 }
 0x4c2   :  { %3409 = vmatpush1.bf16.msra.mxu1 %v4683_v62  ;;  %3491 = vmatpush1.bf16.msra.mxu0 %v4686_v63  ;;  %v4017_v62 = vld [vmem:[#allocation2] ss:$0 sm:$0xff] }
 0x4c3   :  { %3410 = vmatprep.subr.bf16.mxu1 %v4691_v0  ;;  %3492 = vmatprep.subr.bf16.mxu0 %v4694_v1 }
 0x4c6   :  { %3411 = vmatpush1.bf16.msra.mxu1 %v4689_v40  ;;  %3493 = vmatpush1.bf16.msra.mxu0 %v4692_v3 }
 0x4c7   :  { %3412 = vmatprep.subr.bf16.mxu1 %v4697_v4  ;;  %3494 = vmatprep.subr.bf16.mxu0 %v4700_v5 }
 0x4ca   :  { %3413 = vmatpush1.bf16.msra.mxu1 %v4695_v44  ;;  %3495 = vmatpush1.bf16.msra.mxu0 %v4698_v7 }
 0x4cb   :  { %3414 = vmatprep.subr.bf16.mxu1 %v4703_v9  ;;  %3496 = vmatprep.subr.bf16.mxu0 %v4706_v10 }
 0x4ce   :  { %3415 = vmatpush1.bf16.msra.mxu1 %v4701_v11  ;;  %3497 = vmatpush1.bf16.msra.mxu0 %v4704_v12 }
 0x4d1   :  { %3417 = vmatmul.mubr.bf16.vlgmr.msra.gmra.mrb[12].mxu1 %v2551_v14  ;;  %3499 = vmatmul.mubr.bf16.vlgmr.msra.gmra.mrb[16].mxu0 %v2551_v14 }
 0x5a4   :  { %v3418_v61 = vpop.f32.mrb[12].mxu1  ;;  %v3500_v24 = vpop.f32.mrb[16].mxu0 }
 0x5a5   :  { %v4027_v25 = vadd.f32 %v3418_v61, %v2686_v18  ;;  %v4029_v27 = vadd.f32 %v3500_v24, %v2694_v19  ;;  %v3420_v2 = vpop.f32.mrb[13].mxu1  ;;  %v3502_v28 = vpop.f32.mrb[17].mxu0 }
 0x5a6   :  { %v4028_v29 = vadd.f32 %v3420_v2, %v2690_v20  ;;  %v4030_v30 = vadd.f32 %v3502_v28, %v2698_v21  ;;  %v3422_v31 = vpop.f32.mrb[14].mxu1  ;;  %v3504_v32 = vpop.f32.mrb[18].mxu0 }
 0x5a7   :  { %vm3507_vm2 = vcmp.ne.f32.partialorder %v4027_v25, %v4027_v25  ;;  %vm3509_vm3 = vcmp.ne.f32.partialorder %v4029_v27, %v4029_v27  ;;  %v3423_v34 = vpop.f32.mrb[15].mxu1  ;;  %v3505_v57 = vpop.f32.mrb[19].mxu0 }
 0x5a8   :  { %v3511_v35 = vsel %vm3507_vm2, 0.0, %v4027_v25  ;;  %v3513_v36 = vsel %vm3509_vm3, 0.0, %v4029_v27  ;;  %vm3508_vm4 = vcmp.ne.f32.partialorder %v4028_v29, %v4028_v29  ;;  %vm3510_vm5 = vcmp.ne.f32.partialorder %v4030_v30, %v4030_v30 }
 0x5a9   :  { %v3515_v37 = vmax.f32 %v3511_v35, 0.0  ;;  %v3517_v38 = vmax.f32 %v3513_v36, 0.0  ;;  %v3512_v39 = vsel %vm3508_vm4, 0.0, %v4028_v29  ;;  %v3514_v16 = vsel %vm3510_vm5, 0.0, %v4030_v30 }
 0x5aa   :  { %v3516_v41 = vmax.f32 %v3512_v39, 0.0  ;;  %v3518_v43 = vmax.f32 %v3514_v16, 0.0 }
 0x5ab   :  { %v3519_v45 = vmin.f32 %v3515_v37, 3.4028235e+38  ;;  %v3521_v46 = vmin.f32 %v3517_v38, 3.4028235e+38 }
 0x5ac   :  { %v3520_v58 = vmin.f32 %v3516_v41, 3.4028235e+38  ;;  %v3522_v47 = vmin.f32 %v3518_v43, 3.4028235e+38 }
 0x5ad   :  { %v3545_v49 = vmul.f32 %v3528_v33, %v3519_v45  ;;  %v3547_v51 = vmul.f32 %v3536_v22, %v3521_v46 }
 0x5ae   :  { %v3546_v50 = vmul.f32 %v3532_v42, %v3520_v58  ;;  %v3548_v53 = vmul.f32 %v3540_v48, %v3522_v47 }
 0x5af   :  { %v3549_v52 = vsel %vm490_vm1, %v3545_v49, 0.0  ;;  %v3552_v60 = vsel %vm490_vm1, %v3547_v51, 0.0 }
 0x5b0   :  { %v3550_v54 = vsel %vm490_vm1, %v3546_v50, 0.0  ;;  %v3554_v26 = vsel %vm490_vm1, %v3548_v53, 0.0 }
 0x5b1   :  { %v3551_v55 = vadd.f32 %v3550_v54, %v3549_v52 }
 0x5b3   :  { %v3553_v56 = vadd.f32 %v3552_v60, %v3551_v55 }
 0x5b5   :  { %v3555_v59 = vadd.f32 %v3554_v26, %v3553_v56 }
 0x5b7   :  { %3556 = vadd.xlane.f32.xlu0 %v3555_v59 }
 0x644   :  { %v3557_v63 = vpop.xlane.xlu0 %3556 }
 0x645   :  { %v3565_v0 = vadd.f32 %v4017_v62, %v3557_v63 }
 0x647   :  { %vm3566_vm6 = vcmp.ne.f32.partialorder %v3565_v0, %v3565_v0 }
 0x648   :  { %v3567_v17 = vsel %vm3566_vm6, 0.0, %v3565_v0 }
 0x649   :  { %v4018_v1 = vmul.f32 -1.442695, %v3567_v17 }
 0x64b   :  { %4707 = vpow2.f32 %v4018_v1 }
 0x655   :  { %v4708_v40 = vpop.eup %4707 }
 0x656   :  { %v3571_v3 = vadd.f32 1.0, %v4708_v40 }
 0x658   :  { %4709 = vrcp.f32 %v3571_v3 }
 0x662   :  { %v4710_v4 = vpop.eup %4709 }
 0x663   :  { %3575 = vst.msk [vmem:[%s5172_s14] sm:$0x3] %vm3574_vm7, %v4710_v4 }
 0x664   :  { %3580 = vsyncpa [#allocation4], 1 }
 0x665   :  { %3581 = vsyncpa [#allocation6], 1 }
 0x666   :  { %3582 = vsyncpa [#allocation9], 1 }
 0x667   :  { %3583 = vsyncpa [#allocation12], 1 }

</bundles_post_ra>
